<compile_context>
chip_gen: v7x
topology: tpu7x:2x2x1
jax: 0.10.0
libtpu: 0.0.40
codegen_flags: <defaults>
</compile_context>

<pallas_src>
import functools
import math

import jax
import jax.numpy as jnp
from jax.experimental import pallas as pl
from jax.experimental.pallas import tpu as pltpu


def _round_up(x, m):
    return ((x + m - 1) // m) * m


def _vmem_capacity_bytes():
    try:
        return int(pltpu.get_tpu_info().vmem_capacity_bytes)
    except Exception:
        return 64 << 20  # conservative fallback (v7x per-TensorCore size)


# -----------------------------------------------------------------------------
# Fused kernel: one (batch-tile, oc-tile) grid step computes the convolution
# for `nb` images by reducing KH*KW shifted-window taps on the MXU.
# -----------------------------------------------------------------------------
def _ntk_conv2d_kernel(x_ref, w_ref, b_ref, o_ref, *, kh, kw, stride, oh, ow,
                       add_bias):
    # x_ref: (nb, Hp, Wp, Cp)  zero-padded NHWC input tile
    # w_ref: (KH*KW, Cp, TN)   pre-scaled weight taps (grid-invariant when
    #                          TN == OC_pad -> DMA'd once)
    # b_ref: (1, TN)           pre-scaled bias row (f32)
    # o_ref: (nb, OH, OW, TN)  lane-dense output tile
    nb, _, _, cp = x_ref.shape
    tn = o_ref.shape[-1]
    m = nb * oh * ow

    acc = jnp.zeros((m, tn), jnp.float32)
    for ki in range(kh):
        for kj in range(kw):
            if stride == 1:
                xs = x_ref[:, ki:ki + oh, kj:kj + ow, :]
            else:
                xs = x_ref[:, pl.ds(ki, oh, stride=stride),
                           pl.ds(kj, ow, stride=stride), :]
            # (nb, OH, OW, Cp) -> (nb*OH*OW, Cp); MXU matmul, f32 accumulation.
            acc = acc + jnp.dot(xs.reshape(m, cp), w_ref[ki * kw + kj],
                                preferred_element_type=jnp.float32)
    if add_bias:
        acc = acc + b_ref[...].astype(jnp.float32)
    o_ref[...] = acc.reshape(nb, oh, ow, tn).astype(o_ref.dtype)


# -----------------------------------------------------------------------------
# Wrapper: NTKConv2d.forward
# -----------------------------------------------------------------------------
def ntk_conv2d(x, weight, bias, *, stride=1, padding=0, add_bias=True,
               compute_dtype=None, out_format="NCHW"):
    """x: (N, C, H, W); weight: (OC, C, KH, KW); bias: (OC,) or None."""
    n, c, h, w = x.shape
    oc, _, kh, kw = weight.shape
    oh = (h + 2 * padding - kh) // stride + 1
    ow = (w + 2 * padding - kw) // stride + 1
    assert oh > 0 and ow > 0, "empty output"

    cdt = jnp.dtype(compute_dtype) if compute_dtype is not None else jnp.dtype(x.dtype)
    out_dtype = x.dtype
    itemsize = cdt.itemsize

    # ---- one-time operand prep (scales folded here, not in the kernel) ------
    hp, wp = h + 2 * padding, w + 2 * padding
    c_pad = _round_up(max(c, 1), 8)      # 8-aligned contraction dim for the MXU
    oc_pad = _round_up(oc, 128)          # lane-dense, unmasked output stores

    # NCHW -> zero-padded NHWC, channels zero-padded to c_pad.
    xp = jnp.transpose(x.astype(cdt), (0, 2, 3, 1))
    xp = jnp.pad(xp, ((0, 0), (padding, padding), (padding, padding),
                      (0, c_pad - c)))

    # Weight -> (KH*KW, Cp, OCp) taps with the NTK scale folded in (true OC).
    w_taps = jnp.transpose(weight, (2, 3, 1, 0)).reshape(kh * kw, c, oc)
    w_taps = (w_taps * math.sqrt(1.0 / oc)).astype(cdt)
    w_taps = jnp.pad(w_taps, ((0, 0), (0, c_pad - c), (0, oc_pad - oc)))

    use_bias = add_bias and (bias is not None)
    b_vec = bias if bias is not None else jnp.zeros((oc,), jnp.float32)
    b_row = (b_vec.astype(jnp.float32) * math.sqrt(0.1)).reshape(1, oc)
    b_row = jnp.pad(b_row, ((0, 0), (0, oc_pad - oc)))

    # ---- tiling: OC tile (prefer grid-invariant full OCp), then batch tile --
    vmem_cap = _vmem_capacity_bytes()
    budget = min(vmem_cap // 2, 32 << 20)    # per-step working-set target

    def w_tile_bytes(tn_):
        return 2 * kh * kw * _round_up(c_pad, 8) * _round_up(tn_, 128) * itemsize

    tn = oc_pad
    if w_tile_bytes(tn) > budget // 3:
        tn = 256 if (oc_pad % 256 == 0 and w_tile_bytes(256) <= budget // 3) else 128

    def step_bytes(nb_, tn_):
        # Mosaic (8,128) layout padding on the last two dims, 2x double-buffer.
        x_t = 2 * nb_ * hp * _round_up(wp, 8) * _round_up(c_pad, 128) * itemsize
        o_t = 2 * nb_ * oh * _round_up(ow, 8) * tn_ * itemsize
        acc = 3 * nb_ * oh * ow * tn_ * 4            # f32 accumulator + temps
        return x_t + o_t + acc + w_tile_bytes(tn_) + 2 * 8 * oc_pad * 4

    nb = n
    while nb > 1 and step_bytes(nb, tn) > budget:
        nb = (nb + 1) // 2
    # Megacore: if the OC axis has only one tile, give the batch axis >= 2
    # "parallel" steps (when possible) so v7x's 2 TensorCores both get work;
    # costs at most one extra ~0.35us step on single-core chips (v5e/v6e).
    if oc_pad // tn < 2 and nb == n and n > 1:
        nb = (n + 1) // 2

    n_pad = _round_up(n, nb)
    if n_pad != n:
        xp = jnp.pad(xp, ((0, n_pad - n), (0, 0), (0, 0), (0, 0)))

    vmem_limit = int(min(max(step_bytes(nb, tn) + (4 << 20), 16 << 20),
                         int(vmem_cap * 0.9)))

    kernel = functools.partial(
        _ntk_conv2d_kernel, kh=kh, kw=kw, stride=stride, oh=oh, ow=ow,
        add_bias=use_bias)

    grid = (n_pad // nb, oc_pad // tn)
    out4 = pl.pallas_call(
        kernel,
        out_shape=jax.ShapeDtypeStruct((n_pad, oh, ow, oc_pad), out_dtype),
        grid_spec=pltpu.PrefetchScalarGridSpec(
            num_scalar_prefetch=0,
            grid=grid,
            in_specs=[
                pl.BlockSpec((nb, hp, wp, c_pad), lambda i, j: (i, 0, 0, 0)),
                pl.BlockSpec((kh * kw, c_pad, tn), lambda i, j: (0, 0, j)),
                pl.BlockSpec((1, tn), lambda i, j: (0, j)),
            ],
            out_specs=pl.BlockSpec((nb, oh, ow, tn), lambda i, j: (i, 0, 0, j)),
        ),
        compiler_params=pltpu.CompilerParams(
            dimension_semantics=("parallel", "parallel"),
            vmem_limit_bytes=vmem_limit),
    )(xp, w_taps, b_row)

    out = out4[:n, :, :, :oc]                 # drop batch / OC padding
    if out_format == "NHWC":
        return out                            # skip the layout transpose
    return jnp.transpose(out, (0, 3, 1, 2))   # NCHW to match the PyTorch module


# -----------------------------------------------------------------------------
# Reference (plain JAX) for the correctness check.
# -----------------------------------------------------------------------------
def ntk_conv2d_ref(x, weight, bias, *, stride=1, padding=0, add_bias=True):
    oc = weight.shape[0]
    out = jax.lax.conv_general_dilated(
        x, jnp.sqrt(1.0 / oc) * weight, window_strides=(stride, stride),
        padding=[(padding, padding), (padding, padding)],
        dimension_numbers=("NCHW", "OIHW", "NCHW"))
    if add_bias and bias is not None:
        out = out + (jnp.sqrt(0.1) * bias)[None, :, None, None]
    return out


if __name__ == "__main__":
    # Module config matching NTKConv2d(4, 8, 3, stride=1, padding=1, bias=True).
    in_channels, out_channels, kernel_size = 4, 8, 3
    stride, padding = 1, 1

    key = jax.random.PRNGKey(0)
    kx, kwt, kb = jax.random.split(key, 3)

    # nn.init.normal_(weight, 0, 1) / normal_(bias, 0, 1)
    weight = jax.random.normal(
        kwt, (out_channels, in_channels, kernel_size, kernel_size), jnp.float32)
    bias = jax.random.normal(kb, (out_channels,), jnp.float32)

    # Input: NCHW, small shape.
    x = jax.random.normal(kx, (2, in_channels, 16, 16), jnp.float32)

    out = ntk_conv2d(x, weight, bias, stride=stride, padding=padding,
                     add_bias=True)
    out = jax.block_until_ready(out)

    ref = ntk_conv2d_ref(x, weight, bias, stride=stride, padding=padding,
                         add_bias=True)
    assert out.shape == ref.shape == (2, out_channels, 16, 16)
    assert jnp.allclose(out, ref, atol=2e-4, rtol=2e-4), "mismatch vs reference"

    print("KERNEL_OK")
</pallas_src>

<mosaic_0001>
module attributes {stable_mosaic.version = 11 : i64} {
  func.func @_ntk_conv2d_kernel(%arg0: i32, %arg1: i32, %arg2: memref<1x18x18x8xf32, #tpu.memory_space<vmem>>, %arg3: memref<9x8x128xf32, #tpu.memory_space<vmem>>, %arg4: memref<1x128xf32, #tpu.memory_space<vmem>>, %arg5: memref<1x16x16x128xf32, #tpu.memory_space<vmem>>) attributes {dimension_semantics = [#tpu.dimension_semantics<parallel>, #tpu.dimension_semantics<parallel>], iteration_bounds = array<i64: 2, 1>, scalar_prefetch = 0 : i64, scratch_operands = 0 : i64, tpu.core_type = #tpu.core_type<tc>, window_params = [{transform_indices = @transform_0, window_bounds = array<i64: 1, 18, 18, 8>}, {transform_indices = @transform_1, window_bounds = array<i64: 9, 8, 128>}, {transform_indices = @transform_2, window_bounds = array<i64: 1, 128>}, {transform_indices = @transform_3, window_bounds = array<i64: 1, 16, 16, 128>}]} {
    %cst = arith.constant 0.000000e+00 : f32
    %0 = vector.broadcast %cst : f32 to vector<256x128xf32>
    %c0 = arith.constant 0 : index
    %c0_0 = arith.constant 0 : index
    %c0_1 = arith.constant 0 : index
    %c0_2 = arith.constant 0 : index
    %1 = vector.load %arg2[%c0, %c0_0, %c0_1, %c0_2] : memref<1x18x18x8xf32, #tpu.memory_space<vmem>>, vector<1x16x16x8xf32>
    %2 = vector.shape_cast %1 : vector<1x16x16x8xf32> to vector<256x8xf32>
    %c0_3 = arith.constant 0 : index
    %c0_4 = arith.constant 0 : index
    %c0_5 = arith.constant 0 : index
    %3 = vector.load %arg3[%c0_3, %c0_4, %c0_5] : memref<9x8x128xf32, #tpu.memory_space<vmem>>, vector<1x8x128xf32>
    %4 = vector.shape_cast %3 : vector<1x8x128xf32> to vector<8x128xf32>
    %cst_6 = arith.constant dense<0.000000e+00> : vector<256x128xf32>
    %5 = tpu.matmul %2, %4, %cst_6 {dimension_numbers = #tpu.dot_dimension_numbers<[1], [0], [0], [1], [0, 0, 1, 1], [], []>} : vector<256x8xf32>, vector<8x128xf32>, vector<256x128xf32> -> vector<256x128xf32>
    %6 = arith.addf %0, %5 : vector<256x128xf32>
    %c0_7 = arith.constant 0 : index
    %c0_8 = arith.constant 0 : index
    %c1 = arith.constant 1 : index
    %c0_9 = arith.constant 0 : index
    %7 = vector.load %arg2[%c0_7, %c0_8, %c1, %c0_9] : memref<1x18x18x8xf32, #tpu.memory_space<vmem>>, vector<1x16x16x8xf32>
    %8 = vector.shape_cast %7 : vector<1x16x16x8xf32> to vector<256x8xf32>
    %c1_10 = arith.constant 1 : index
    %c0_11 = arith.constant 0 : index
    %c0_12 = arith.constant 0 : index
    %9 = vector.load %arg3[%c1_10, %c0_11, %c0_12] : memref<9x8x128xf32, #tpu.memory_space<vmem>>, vector<1x8x128xf32>
    %10 = vector.shape_cast %9 : vector<1x8x128xf32> to vector<8x128xf32>
    %cst_13 = arith.constant dense<0.000000e+00> : vector<256x128xf32>
    %11 = tpu.matmul %8, %10, %cst_13 {dimension_numbers = #tpu.dot_dimension_numbers<[1], [0], [0], [1], [0, 0, 1, 1], [], []>} : vector<256x8xf32>, vector<8x128xf32>, vector<256x128xf32> -> vector<256x128xf32>
    %12 = arith.addf %6, %11 : vector<256x128xf32>
    %c0_14 = arith.constant 0 : index
    %c0_15 = arith.constant 0 : index
    %c2 = arith.constant 2 : index
    %c0_16 = arith.constant 0 : index
    %13 = vector.load %arg2[%c0_14, %c0_15, %c2, %c0_16] : memref<1x18x18x8xf32, #tpu.memory_space<vmem>>, vector<1x16x16x8xf32>
    %14 = vector.shape_cast %13 : vector<1x16x16x8xf32> to vector<256x8xf32>
    %c2_17 = arith.constant 2 : index
    %c0_18 = arith.constant 0 : index
    %c0_19 = arith.constant 0 : index
    %15 = vector.load %arg3[%c2_17, %c0_18, %c0_19] : memref<9x8x128xf32, #tpu.memory_space<vmem>>, vector<1x8x128xf32>
    %16 = vector.shape_cast %15 : vector<1x8x128xf32> to vector<8x128xf32>
    %cst_20 = arith.constant dense<0.000000e+00> : vector<256x128xf32>
    %17 = tpu.matmul %14, %16, %cst_20 {dimension_numbers = #tpu.dot_dimension_numbers<[1], [0], [0], [1], [0, 0, 1, 1], [], []>} : vector<256x8xf32>, vector<8x128xf32>, vector<256x128xf32> -> vector<256x128xf32>
    %18 = arith.addf %12, %17 : vector<256x128xf32>
    %c0_21 = arith.constant 0 : index
    %c1_22 = arith.constant 1 : index
    %c0_23 = arith.constant 0 : index
    %c0_24 = arith.constant 0 : index
    %19 = vector.load %arg2[%c0_21, %c1_22, %c0_23, %c0_24] : memref<1x18x18x8xf32, #tpu.memory_space<vmem>>, vector<1x16x16x8xf32>
    %20 = vector.shape_cast %19 : vector<1x16x16x8xf32> to vector<256x8xf32>
    %c3 = arith.constant 3 : index
    %c0_25 = arith.constant 0 : index
    %c0_26 = arith.constant 0 : index
    %21 = vector.load %arg3[%c3, %c0_25, %c0_26] : memref<9x8x128xf32, #tpu.memory_space<vmem>>, vector<1x8x128xf32>
    %22 = vector.shape_cast %21 : vector<1x8x128xf32> to vector<8x128xf32>
    %cst_27 = arith.constant dense<0.000000e+00> : vector<256x128xf32>
    %23 = tpu.matmul %20, %22, %cst_27 {dimension_numbers = #tpu.dot_dimension_numbers<[1], [0], [0], [1], [0, 0, 1, 1], [], []>} : vector<256x8xf32>, vector<8x128xf32>, vector<256x128xf32> -> vector<256x128xf32>
    %24 = arith.addf %18, %23 : vector<256x128xf32>
    %c0_28 = arith.constant 0 : index
    %c1_29 = arith.constant 1 : index
    %c1_30 = arith.constant 1 : index
    %c0_31 = arith.constant 0 : index
    %25 = vector.load %arg2[%c0_28, %c1_29, %c1_30, %c0_31] : memref<1x18x18x8xf32, #tpu.memory_space<vmem>>, vector<1x16x16x8xf32>
    %26 = vector.shape_cast %25 : vector<1x16x16x8xf32> to vector<256x8xf32>
    %c4 = arith.constant 4 : index
    %c0_32 = arith.constant 0 : index
    %c0_33 = arith.constant 0 : index
    %27 = vector.load %arg3[%c4, %c0_32, %c0_33] : memref<9x8x128xf32, #tpu.memory_space<vmem>>, vector<1x8x128xf32>
    %28 = vector.shape_cast %27 : vector<1x8x128xf32> to vector<8x128xf32>
    %cst_34 = arith.constant dense<0.000000e+00> : vector<256x128xf32>
    %29 = tpu.matmul %26, %28, %cst_34 {dimension_numbers = #tpu.dot_dimension_numbers<[1], [0], [0], [1], [0, 0, 1, 1], [], []>} : vector<256x8xf32>, vector<8x128xf32>, vector<256x128xf32> -> vector<256x128xf32>
    %30 = arith.addf %24, %29 : vector<256x128xf32>
    %c0_35 = arith.constant 0 : index
    %c1_36 = arith.constant 1 : index
    %c2_37 = arith.constant 2 : index
    %c0_38 = arith.constant 0 : index
    %31 = vector.load %arg2[%c0_35, %c1_36, %c2_37, %c0_38] : memref<1x18x18x8xf32, #tpu.memory_space<vmem>>, vector<1x16x16x8xf32>
    %32 = vector.shape_cast %31 : vector<1x16x16x8xf32> to vector<256x8xf32>
    %c5 = arith.constant 5 : index
    %c0_39 = arith.constant 0 : index
    %c0_40 = arith.constant 0 : index
    %33 = vector.load %arg3[%c5, %c0_39, %c0_40] : memref<9x8x128xf32, #tpu.memory_space<vmem>>, vector<1x8x128xf32>
    %34 = vector.shape_cast %33 : vector<1x8x128xf32> to vector<8x128xf32>
    %cst_41 = arith.constant dense<0.000000e+00> : vector<256x128xf32>
    %35 = tpu.matmul %32, %34, %cst_41 {dimension_numbers = #tpu.dot_dimension_numbers<[1], [0], [0], [1], [0, 0, 1, 1], [], []>} : vector<256x8xf32>, vector<8x128xf32>, vector<256x128xf32> -> vector<256x128xf32>
    %36 = arith.addf %30, %35 : vector<256x128xf32>
    %c0_42 = arith.constant 0 : index
    %c2_43 = arith.constant 2 : index
    %c0_44 = arith.constant 0 : index
    %c0_45 = arith.constant 0 : index
    %37 = vector.load %arg2[%c0_42, %c2_43, %c0_44, %c0_45] : memref<1x18x18x8xf32, #tpu.memory_space<vmem>>, vector<1x16x16x8xf32>
    %38 = vector.shape_cast %37 : vector<1x16x16x8xf32> to vector<256x8xf32>
    %c6 = arith.constant 6 : index
    %c0_46 = arith.constant 0 : index
    %c0_47 = arith.constant 0 : index
    %39 = vector.load %arg3[%c6, %c0_46, %c0_47] : memref<9x8x128xf32, #tpu.memory_space<vmem>>, vector<1x8x128xf32>
    %40 = vector.shape_cast %39 : vector<1x8x128xf32> to vector<8x128xf32>
    %cst_48 = arith.constant dense<0.000000e+00> : vector<256x128xf32>
    %41 = tpu.matmul %38, %40, %cst_48 {dimension_numbers = #tpu.dot_dimension_numbers<[1], [0], [0], [1], [0, 0, 1, 1], [], []>} : vector<256x8xf32>, vector<8x128xf32>, vector<256x128xf32> -> vector<256x128xf32>
    %42 = arith.addf %36, %41 : vector<256x128xf32>
    %c0_49 = arith.constant 0 : index
    %c2_50 = arith.constant 2 : index
    %c1_51 = arith.constant 1 : index
    %c0_52 = arith.constant 0 : index
    %43 = vector.load %arg2[%c0_49, %c2_50, %c1_51, %c0_52] : memref<1x18x18x8xf32, #tpu.memory_space<vmem>>, vector<1x16x16x8xf32>
    %44 = vector.shape_cast %43 : vector<1x16x16x8xf32> to vector<256x8xf32>
    %c7 = arith.constant 7 : index
    %c0_53 = arith.constant 0 : index
    %c0_54 = arith.constant 0 : index
    %45 = vector.load %arg3[%c7, %c0_53, %c0_54] : memref<9x8x128xf32, #tpu.memory_space<vmem>>, vector<1x8x128xf32>
    %46 = vector.shape_cast %45 : vector<1x8x128xf32> to vector<8x128xf32>
    %cst_55 = arith.constant dense<0.000000e+00> : vector<256x128xf32>
    %47 = tpu.matmul %44, %46, %cst_55 {dimension_numbers = #tpu.dot_dimension_numbers<[1], [0], [0], [1], [0, 0, 1, 1], [], []>} : vector<256x8xf32>, vector<8x128xf32>, vector<256x128xf32> -> vector<256x128xf32>
    %48 = arith.addf %42, %47 : vector<256x128xf32>
    %c0_56 = arith.constant 0 : index
    %c2_57 = arith.constant 2 : index
    %c2_58 = arith.constant 2 : index
    %c0_59 = arith.constant 0 : index
    %49 = vector.load %arg2[%c0_56, %c2_57, %c2_58, %c0_59] : memref<1x18x18x8xf32, #tpu.memory_space<vmem>>, vector<1x16x16x8xf32>
    %50 = vector.shape_cast %49 : vector<1x16x16x8xf32> to vector<256x8xf32>
    %c8 = arith.constant 8 : index
    %c0_60 = arith.constant 0 : index
    %c0_61 = arith.constant 0 : index
    %51 = vector.load %arg3[%c8, %c0_60, %c0_61] : memref<9x8x128xf32, #tpu.memory_space<vmem>>, vector<1x8x128xf32>
    %52 = vector.shape_cast %51 : vector<1x8x128xf32> to vector<8x128xf32>
    %cst_62 = arith.constant dense<0.000000e+00> : vector<256x128xf32>
    %53 = tpu.matmul %50, %52, %cst_62 {dimension_numbers = #tpu.dot_dimension_numbers<[1], [0], [0], [1], [0, 0, 1, 1], [], []>} : vector<256x8xf32>, vector<8x128xf32>, vector<256x128xf32> -> vector<256x128xf32>
    %54 = arith.addf %48, %53 : vector<256x128xf32>
    %c0_63 = arith.constant 0 : index
    %c0_64 = arith.constant 0 : index
    %55 = vector.load %arg4[%c0_63, %c0_64] : memref<1x128xf32, #tpu.memory_space<vmem>>, vector<1x128xf32>
    %56 = vector.broadcast %55 : vector<1x128xf32> to vector<256x128xf32>
    %57 = arith.addf %54, %56 : vector<256x128xf32>
    %58 = vector.shape_cast %57 : vector<256x128xf32> to vector<1x16x16x128xf32>
    %c0_65 = arith.constant 0 : index
    %c0_66 = arith.constant 0 : index
    %c0_67 = arith.constant 0 : index
    %c0_68 = arith.constant 0 : index
    %59 = vector.load %arg5[%c0_65, %c0_66, %c0_67, %c0_68] : memref<1x16x16x128xf32, #tpu.memory_space<vmem>>, vector<1x16x16x128xf32>
    tpu.vector_store %arg5[%c0_65, %c0_66, %c0_67, %c0_68], %58 {strides = array<i32>} : memref<1x16x16x128xf32, #tpu.memory_space<vmem>>, vector<1x16x16x128xf32>,
    return
  }
  func.func @transform_0(%arg0: i32, %arg1: i32) -> (i32, i32, i32, i32) {
    %c0_i32 = arith.constant 0 : i32
    %c0_i32_0 = arith.constant 0 : i32
    %c0_i32_1 = arith.constant 0 : i32
    %c0_i32_2 = arith.constant 0 : i32
    return %arg0, %c0_i32, %c0_i32_0, %c0_i32_1 : i32, i32, i32, i32
  }
  func.func @transform_1(%arg0: i32, %arg1: i32) -> (i32, i32, i32) {
    %c0_i32 = arith.constant 0 : i32
    %c0_i32_0 = arith.constant 0 : i32
    %c0_i32_1 = arith.constant 0 : i32
    return %c0_i32, %c0_i32_0, %arg1 : i32, i32, i32
  }
  func.func @transform_2(%arg0: i32, %arg1: i32) -> (i32, i32) {
    %c0_i32 = arith.constant 0 : i32
    %c0_i32_0 = arith.constant 0 : i32
    return %c0_i32, %arg1 : i32, i32
  }
  func.func @transform_3(%arg0: i32, %arg1: i32) -> (i32, i32, i32, i32) {
    %c0_i32 = arith.constant 0 : i32
    %c0_i32_0 = arith.constant 0 : i32
    %c0_i32_1 = arith.constant 0 : i32
    return %arg0, %c0_i32, %c0_i32_0, %arg1 : i32, i32, i32, i32
  }
}

</mosaic_0001>

<bundles_post_ra>
// kernel: tpu_custom_call.1
= control target key start
LH: loop header
LB: loop body
LE: loop exit
PB: predicated region body
PF: predicated region fallthrough
CT: control target
= control target key end

     0   :  { %8 = vsyncpa [#allocation3], 0  ;;  %s6591_s0 = inlined_call_operand.vmem [shape: f32[2,18,18,8], index: 0, kind: input, shape index: {}]   ;;  %s6592_s1 = inlined_call_operand.vmem [shape: f32[9,8,128], index: 1, kind: input, shape index: {}]   ;;  %s6593_s2 = inlined_call_operand.vmem [shape: f32[1,128], index: 2, kind: input, shape index: {}]   ;;  %s6594_s3 = inlined_call_operand.hbm [shape: f32[2,16,16,128], index: 3, kind: output, shape index: {}]  }
   0x1   :  { %10 = vsyncpa [#allocation3 + $0x1], 0  ;;  %s5490_s12 = smov 0   ;;  %s5492_s13 = smov 0  }
   0x2   :  { %s5494_s14 = smov 0   ;;  %s5496_s15 = smov 0  }
   0x3   :  { %s5498_s16 = smov 0   ;;  %s5500_s17 = smov 0  }
   0x4 LB: > { %s3820_s18 = sadd.s32 4294967295, %s5465_s17   ;;  %s3821_s19 = sadd.s32 4294967294, %s5465_s17   ;;  %s5465_s17 = sphi %s5500_s17, %s16_s17   ;;  %s5461_s16 = sphi %s5498_s16, %s6710_s16   ;;  %s5457_s15 = sphi %s5496_s15, %s6709_s15   ;;  %s5453_s14 = sphi %s5494_s14, %s6708_s14   ;;  %s5449_s13 = sphi %s5492_s13, %s6707_s13   ;;  %s5445_s12 = sphi %s5490_s12, %s6706_s12  }
   0x5   : > { %s28_s20 = sadd.s32 1, %s5461_s16  ;;  %s115_s21 = sadd.s32 1, %s5453_s14 }
   0x6   : > { %p30_p0 = scmp.ge.s32.totalorder %s28_s20, 2  ;;  %p125_p1 = scmp.ne.s32.totalorder %s5453_s14, %s5449_s13 }
   0x7   : > { %p126_p2 = scmp.eq.s32.totalorder %s3820_s18, 1  ;;  %p131_p3 = scmp.ne.s32.totalorder %s5449_s13, %s5445_s12 }
   0x8   : > { %s6712_s20 = smov (%p30_p0, %s28_s20), 0  ;;  %p132_p5 = scmp.eq.s32.totalorder %s3821_s19, 1 }
   0x9   : > { %p5530_p4 = por %p126_p2, %p125_p1  ;;  %s110_s23 = ssub.s32 %s5461_s16, %s6712_s20 }
   0xa   : > { %p3826_p6 = scmp.ge.s32.totalorder %s5465_s17, 1  ;;  %p113_p7 = scmp.eq.s32.totalorder %s110_s23, 0 }
   0xb   : > { %p5537_p8 = por %p132_p5, %p131_p3  ;;  %p171_p9 = scmp.lt.s32.totalorder %s5465_s17, 3 }
   0xc   : > { %s5543_s25 = scalar_select %p113_p7, %s5453_s14, %s115_s21  }
   0xd   : > { %p172_p10 = pnand %p3826_p6, %p171_p9 }
   0xf   : > { %175 = sbr.rel (%p172_p10) target bundleno = 547 (0x223), region = 32 }
  0x16   : > { %v3829_v0 = vld [vmem:[%s6592_s1 + $0x8] sm:$0xff]  ;;  %v5551_v1 = vld [vmem:[%s6592_s1 + $0x20] sm:$0xff]  ;;  %p202_p11 = scmp.lt.s32.totalorder %s5457_s15, 1  ;;  %vm281_vm0 = vcmask 64512   ;;  %v4154_v9 = vld [vmem:[%s6592_s1 + $0x30] sm:$0xff]  ;;  %s199_s5 = sand.u32 1, %s5449_s13  }
  0x17   : > { %v246_v2 = vld [vmem:[%s6592_s1] sm:$0xff]  ;;  %4621 = vmatprep.subr.mxu1 %v3829_v0  ;;  %4821 = vmatprep.subr.mxu0 %v5551_v1  ;;  %v4089_v3 = vld [vmem:[%s6592_s1 + $0x28] sm:$0xff]  ;;  %v5585_v10 = vld [vmem:[%s6592_s1 + $0x10] sm:$0xff]  ;;  %s3827_s6 = sshll.u32 %s199_s5, 8  ;;  %s4323_s10 = sshll.u32 %s5457_s15, 12 }
  0x18   : > { %4622 = vmatpush3.msra.mxu1 %v3829_v0  ;;  %4822 = vmatpush3.msra.mxu0 %v5551_v1  ;;  %s203_s7 = scalar_select %p202_p11, %s5457_s15, 1  ;;  %v5700_v28 = vld [vmem:[%s6592_s1 + $0x38] sm:$0xff] }
  0x19   : > { %4671 = vmatprep.subr.mxu1 %v246_v2  ;;  %4871 = vmatprep.subr.mxu0 %v4089_v3  ;;  %v5861_v61 = vld [vmem:[%s6592_s1 + $0x18] sm:$0xff]  ;;  %s6469_s9 = scalar_lea.vmem [#allocation2], %s3827_s6  ;;  %s6536_s21 = scalar_lea.hbm %s6594_s3, %s4323_s10 }
  0x1a   : > { %s5329_s8 = smul.u32 432, %s203_s7  ;;  %s6545_s15 = scalar_lea.sflag [#allocation3], %s199_s5 }
  0x1b   : > { %s5467_s26 = smov [#allocation2]  }
  0x1c   : > { %s5566_s11 = scalar_lea.vmem %s6591_s0, %s5329_s8  ;;  %s5391_s27 = sshll.u32 %s5467_s26, 4  ;;  %s5392_s27 = int_to_ptr.vmem [resolvable:$false] %s5391_s27 }
  0x1d   : > { %v247_v4 = vld [vmem:[%s5566_s11 + $0x1] sm:$0xff]  ;;  %v3992_v5 = vld [vmem:[%s5566_s11 + $0x19] sm:$0xff]  ;;  %v248_v6 = vld [vmem:[%s5566_s11 + $0x9] sm:$0xff]  ;;  %s5393_s28 = scalar_lea.vmem %s5392_s27, 8192 }
  0x1e   : > { %4623 = vmatprep.mubr.msk.f32.mxu1 %vm281_vm0, %v247_v4  ;;  %4823 = vmatprep.mubr.msk.f32.mxu0 %vm281_vm0, %v3992_v5  ;;  %v3993_v7 = vld [vmem:[%s5566_s11 + $0x21] sm:$0xff]  ;;  %v5575_v8 = vld [vmem:[%s5566_s11 + $0x31] sm:$0xff]  ;;  %v5588_v11 = vld [vmem:[%s5566_s11 + $0x39] sm:$0xff] }
  0x1f   : > { %4624 = vmatmul.mubr.msk.f32.vlgmr.msra.gmra.mrb[0].mxu1 %vm281_vm0, %v248_v6  ;;  %4824 = vmatmul.mubr.msk.f32.vlgmr.msra.gmra.mrb[0].mxu0 %vm281_vm0, %v3993_v7  ;;  %v5594_v12 = vld [vmem:[%s5566_s11 + $0x49] sm:$0xff]  ;;  %v5605_v13 = vld [vmem:[%s5566_s11 + $0x51] sm:$0xff]  ;;  %v5608_v14 = vld [vmem:[%s5566_s11 + $0x61] sm:$0xff] }
  0x20   : > { %4672 = vmatpush3.msra.mxu1 %v246_v2  ;;  %4872 = vmatpush3.msra.mxu0 %v4089_v3  ;;  %v5619_v15 = vld [vmem:[%s5566_s11 + $0x69] sm:$0xff]  ;;  %v5622_v16 = vld [vmem:[%s5566_s11 + $0x79] sm:$0xff]  ;;  %v5633_v17 = vld [vmem:[%s5566_s11 + $0x81] sm:$0xff] }
  0x21   : > { %4626 = vmatprep.mubr.msk.f32.mxu1 %vm281_vm0, %v3992_v5  ;;  %4826 = vmatprep.mubr.msk.f32.mxu0 %vm281_vm0, %v5575_v8  ;;  %v5636_v18 = vld [vmem:[%s5566_s11 + $0x91] sm:$0xff]  ;;  %v5647_v19 = vld [vmem:[%s5566_s11 + $0x99] sm:$0xff]  ;;  %v5650_v20 = vld [vmem:[%s5566_s11 + $0xa9] sm:$0xff] }
  0x22   : > { %4921 = vmatprep.subr.mxu0 %v4154_v9  ;;  %4721 = vmatprep.subr.mxu1 %v5585_v10  ;;  %v5661_v21 = vld [vmem:[%s5566_s11 + $0xb1] sm:$0xff]  ;;  %v5664_v22 = vld [vmem:[%s5566_s11 + $0xc1] sm:$0xff]  ;;  %v5675_v23 = vld [vmem:[%s5566_s11 + $0xc9] sm:$0xff] }
  0x23   : > { %4627 = vmatmul.mubr.msk.f32.gmra.mrb[2].mxu1 %vm281_vm0, %v3993_v7  ;;  %4827 = vmatmul.mubr.msk.f32.gmra.mrb[2].mxu0 %vm281_vm0, %v5588_v11  ;;  %v5678_v24 = vld [vmem:[%s5566_s11 + $0x1a] sm:$0xff]  ;;  %v5689_v25 = vld [vmem:[%s5566_s11 + $0x22] sm:$0xff]  ;;  %v5695_v27 = vld [vmem:[%s5566_s11 + $0x32] sm:$0xff] }
  0x24   : > { %4629 = vmatprep.mubr.msk.f32.mxu1 %vm281_vm0, %v5575_v8  ;;  %4829 = vmatprep.mubr.msk.f32.mxu0 %vm281_vm0, %v5594_v12  ;;  %v5692_v26 = vld [vmem:[%s5566_s11 + $0xd9] sm:$0xff]  ;;  %v5709_v29 = vld [vmem:[%s5566_s11 + $0xe1] sm:$0xff]  ;;  %v5717_v31 = vld [vmem:[%s5566_s11 + $0xf1] sm:$0xff] }
  0x25   : > { %6642 = vst [vmem:[#allocation5_spill] sm:$0xff] %v5709_v29  ;;  %v5712_v30 = vld [vmem:[%s5566_s11 + $0x3a] sm:$0xff]  ;;  %6643 = vst [vmem:[#allocation6_spill] sm:$0xff] %v5717_v31  ;;  %v5720_v32 = vld [vmem:[%s5566_s11 + $0x4a] sm:$0xff] }
  0x26   : > { %v5732_v33 = vld [vmem:[%s5566_s11 + $0xf9] sm:$0xff]  ;;  %v5738_v35 = vld [vmem:[%s5566_s11 + $0x109] sm:$0xff]  ;;  %v5752_v37 = vld [vmem:[%s5566_s11 + $0x111] sm:$0xff] }
  0x27   : > { %4630 = vmatmul.mubr.msk.f32.gmra.mrb[4].mxu1 %vm281_vm0, %v5588_v11  ;;  %4830 = vmatmul.mubr.msk.f32.gmra.mrb[4].mxu0 %vm281_vm0, %v5605_v13  ;;  %6644 = vst [vmem:[#allocation7_spill] sm:$0xff] %v5732_v33  ;;  %v5735_v34 = vld [vmem:[%s5566_s11 + $0x52] sm:$0xff]  ;;  %6645 = vst [vmem:[#allocation8_spill] sm:$0xff] %v5738_v35  ;;  %v5741_v36 = vld [vmem:[%s5566_s11 + $0x62] sm:$0xff] }
  0x28   : > { %4632 = vmatprep.mubr.msk.f32.mxu1 %vm281_vm0, %v5594_v12  ;;  %4832 = vmatprep.mubr.msk.f32.mxu0 %vm281_vm0, %v5608_v14  ;;  %6646 = vst [vmem:[#allocation9_spill] sm:$0xff] %v5752_v37  ;;  %v5755_v38 = vld [vmem:[%s5566_s11 + $0x6a] sm:$0xff]  ;;  %v5758_v39 = vld [vmem:[%s5566_s11 + $0x121] sm:$0xff]  ;;  %v5778_v43 = vld [vmem:[%s5566_s11 + $0x139] sm:$0xff] }
  0x29   : > { %6647 = vst [vmem:[#allocation10_spill] sm:$0xff] %v5758_v39  ;;  %v5761_v40 = vld [vmem:[%s5566_s11 + $0x7a] sm:$0xff]  ;;  %v5772_v41 = vld [vmem:[%s5566_s11 + $0x129] sm:$0xff]  ;;  %6649 = vst [vmem:[#allocation12_spill] sm:$0xff] %v5778_v43 }
  0x2a   : > { %6648 = vst [vmem:[#allocation11_spill] sm:$0xff] %v5772_v41  ;;  %v5775_v42 = vld [vmem:[%s5566_s11 + $0x82] sm:$0xff]  ;;  %v5781_v44 = vld [vmem:[%s5566_s11 + $0x92] sm:$0xff]  ;;  %v5795_v46 = vld [vmem:[%s5566_s11 + $0x9a] sm:$0xff] }
  0x2b   : > { %4633 = vmatmul.mubr.msk.f32.gmra.mrb[6].mxu1 %vm281_vm0, %v5605_v13  ;;  %4833 = vmatmul.mubr.msk.f32.gmra.mrb[6].mxu0 %vm281_vm0, %v5619_v15  ;;  %v5792_v45 = vld [vmem:[%s5566_s11 + $0x141] sm:$0xff]  ;;  %v5798_v47 = vld [vmem:[%s5566_s11 + $0x151] sm:$0xff]  ;;  %v5812_v49 = vld [vmem:[%s5566_s11 + $0x159] sm:$0xff] }
  0x2c   : > { %4635 = vmatprep.mubr.msk.f32.mxu1 %vm281_vm0, %v5608_v14  ;;  %4835 = vmatprep.mubr.msk.f32.mxu0 %vm281_vm0, %v5622_v16  ;;  %6650 = vst [vmem:[#allocation13_spill] sm:$0xff] %v5792_v45  ;;  %6651 = vst [vmem:[#allocation14_spill] sm:$0xff] %v5798_v47  ;;  %v5801_v48 = vld [vmem:[%s5566_s11 + $0xaa] sm:$0xff]  ;;  %v5815_v50 = vld [vmem:[%s5566_s11 + $0xb2] sm:$0xff] }
  0x2d   : > { %6652 = vst [vmem:[#allocation15_spill] sm:$0xff] %v5812_v49  ;;  %v5818_v51 = vld [vmem:[%s5566_s11 + $0x169] sm:$0xff]  ;;  %v5832_v53 = vld [vmem:[%s5566_s11 + $0x171] sm:$0xff]  ;;  %v214_v55 = vld [vmem:[%s5566_s11] sm:$0xff] }
  0x2e   : > { %6653 = vst [vmem:[#allocation16_spill] sm:$0xff] %v5818_v51  ;;  %v5821_v52 = vld [vmem:[%s5566_s11 + $0xc2] sm:$0xff]  ;;  %6654 = vst [vmem:[#allocation17_spill] sm:$0xff] %v5832_v53  ;;  %v5835_v54 = vld [vmem:[%s5566_s11 + $0xca] sm:$0xff] }
  0x2f   : > { %4636 = vmatmul.mubr.msk.f32.gmra.mrb[8].mxu1 %vm281_vm0, %v5619_v15  ;;  %4836 = vmatmul.mubr.msk.f32.gmra.mrb[8].mxu0 %vm281_vm0, %v5633_v17  ;;  %v5839_v56 = vld [vmem:[%s5566_s11 + $0xda] sm:$0xff]  ;;  %v215_v57 = vld [vmem:[%s5566_s11 + $0x8] sm:$0xff]  ;;  %v5856_v60 = vld [vmem:[%s5566_s11 + $0xf2] sm:$0xff] }
  0x30   : > { %4638 = vmatprep.mubr.msk.f32.mxu1 %vm281_vm0, %v5622_v16  ;;  %4838 = vmatprep.mubr.msk.f32.mxu0 %vm281_vm0, %v5636_v18  ;;  %v5850_v58 = vld [vmem:[%s5566_s11 + $0xe2] sm:$0xff]  ;;  %v5853_v59 = vld [vmem:[%s5566_s11 + $0x18] sm:$0xff]  ;;  %v5878_v0 = vld [vmem:[%s5566_s11 + $0x30] sm:$0xff] }
  0x31   : > { %6655 = vst [vmem:[#allocation18_spill] sm:$0xff] %v5853_v59  ;;  %v5870_v62 = vld [vmem:[%s5566_s11 + $0x20] sm:$0xff]  ;;  %6657 = vst [vmem:[#allocation20_spill] sm:$0xff] %v5878_v0  ;;  %v5881_v2 = vld [vmem:[%s5566_s11 + $0x10a] sm:$0xff] }
  0x32   : > { %6656 = vst [vmem:[#allocation19_spill] sm:$0xff] %v5870_v62  ;;  %v5873_v63 = vld [vmem:[%s5566_s11 + $0xfa] sm:$0xff]  ;;  %v5896_v4 = vld [vmem:[%s5566_s11 + $0x112] sm:$0xff]  ;;  %v5899_v5 = vld [vmem:[%s5566_s11 + $0x48] sm:$0xff] }
  0x33   : > { %4639 = vmatmul.mubr.msk.f32.gmra.mrb[10].mxu1 %vm281_vm0, %v5633_v17  ;;  %4839 = vmatmul.mubr.msk.f32.gmra.mrb[10].mxu0 %vm281_vm0, %v5647_v19  ;;  %v5893_v3 = vld [vmem:[%s5566_s11 + $0x38] sm:$0xff]  ;;  %6659 = vst [vmem:[#allocation22_spill] sm:$0xff] %v5899_v5  ;;  %v5902_v6 = vld [vmem:[%s5566_s11 + $0x122] sm:$0xff]  ;;  %v5913_v7 = vld [vmem:[%s5566_s11 + $0x50] sm:$0xff] }
  0x34   : > { %4641 = vmatprep.mubr.msk.f32.mxu1 %vm281_vm0, %v5636_v18  ;;  %4841 = vmatprep.mubr.msk.f32.mxu0 %vm281_vm0, %v5650_v20  ;;  %6658 = vst [vmem:[#allocation21_spill] sm:$0xff] %v5893_v3  ;;  %6660 = vst [vmem:[#allocation23_spill] sm:$0xff] %v5913_v7 }
  0x37   : > { %4642 = vmatmul.mubr.msk.f32.gmra.mrb[12].mxu1 %vm281_vm0, %v5647_v19  ;;  %4842 = vmatmul.mubr.msk.f32.gmra.mrb[12].mxu0 %vm281_vm0, %v5661_v21 }
  0x38   : > { %4644 = vmatprep.mubr.msk.f32.mxu1 %vm281_vm0, %v5650_v20  ;;  %4844 = vmatprep.mubr.msk.f32.mxu0 %vm281_vm0, %v5664_v22 }
  0x3b   : > { %4645 = vmatmul.mubr.msk.f32.gmra.mrb[14].mxu1 %vm281_vm0, %v5661_v21  ;;  %4845 = vmatmul.mubr.msk.f32.gmra.mrb[14].mxu0 %vm281_vm0, %v5675_v23 }
  0x3c   : > { %4647 = vmatprep.mubr.msk.f32.mxu1 %vm281_vm0, %v5664_v22  ;;  %4873 = vmatprep.mubr.msk.f32.mxu0 %vm281_vm0, %v5678_v24 }
  0x3f   : > { %4648 = vmatmul.mubr.msk.f32.gmra.mrb[16].mxu1 %vm281_vm0, %v5675_v23  ;;  %4874 = vmatmul.mubr.msk.f32.vlgmr.msra.gmra.mrb[0].mxu0 %vm281_vm0, %v5689_v25 }
  0x40   : > { %4922 = vmatpush3.msra.mxu0 %v4154_v9  ;;  %4650 = vmatprep.mubr.msk.f32.mxu1 %vm281_vm0, %v5692_v26  ;;  %v5916_v9 = vld [vmem:[%s5566_s11 + $0x12a] sm:$0xff] }
  0x41   : > { %4876 = vmatprep.mubr.msk.f32.mxu0 %vm281_vm0, %v5695_v27  ;;  %4971 = vmatprep.subr.mxu0 %v5700_v28 }
  0x43   : > { %4651 = vmatmul.mubr.msk.f32.gmra.mrb[18].mxu1 %vm281_vm0, %v5709_v29  ;;  %4877 = vmatmul.mubr.msk.f32.gmra.mrb[2].mxu0 %vm281_vm0, %v5712_v30  ;;  %v6013_v29 = vld [vmem:[%s5566_s11 + $0xd8] sm:$0xff] }
  0x44   : > { %4653 = vmatprep.mubr.msk.f32.mxu1 %vm281_vm0, %v5717_v31  ;;  %4879 = vmatprep.mubr.msk.f32.mxu0 %vm281_vm0, %v5720_v32  ;;  %v5996_v31 = vld [vmem:[%s5566_s11 + $0x18a] sm:$0xff] }
  0x45   : > { %6671 = vst [vmem:[#allocation34_spill] sm:$0xff] %v5996_v31 }
  0x47   : > { %4654 = vmatmul.mubr.msk.f32.gmra.mrb[20].mxu1 %vm281_vm0, %v5732_v33  ;;  %4880 = vmatmul.mubr.msk.f32.gmra.mrb[4].mxu0 %vm281_vm0, %v5735_v34  ;;  %v5982_v33 = vld [vmem:[%s5566_s11 + $0x182] sm:$0xff] }
  0x48   : > { %4656 = vmatprep.mubr.msk.f32.mxu1 %vm281_vm0, %v5738_v35  ;;  %4882 = vmatprep.mubr.msk.f32.mxu0 %vm281_vm0, %v5741_v36  ;;  %v5979_v35 = vld [vmem:[%s5566_s11 + $0xa8] sm:$0xff]  ;;  %6669 = vst [vmem:[#allocation32_spill] sm:$0xff] %v5982_v33 }
  0x49   : > { %6668 = vst [vmem:[#allocation31_spill] sm:$0xff] %v5979_v35 }
  0x4b   : > { %4657 = vmatmul.mubr.msk.f32.gmra.mrb[22].mxu1 %vm281_vm0, %v5752_v37  ;;  %4883 = vmatmul.mubr.msk.f32.gmra.mrb[6].mxu0 %vm281_vm0, %v5755_v38  ;;  %v5976_v37 = vld [vmem:[%s5566_s11 + $0x172] sm:$0xff] }
  0x4c   : > { %4659 = vmatprep.mubr.msk.f32.mxu1 %vm281_vm0, %v5758_v39  ;;  %4885 = vmatprep.mubr.msk.f32.mxu0 %vm281_vm0, %v5761_v40  ;;  %v5973_v39 = vld [vmem:[%s5566_s11 + $0x98] sm:$0xff]  ;;  %6667 = vst [vmem:[#allocation30_spill] sm:$0xff] %v5976_v37 }
  0x4d   : > { %6666 = vst [vmem:[#allocation29_spill] sm:$0xff] %v5973_v39 }
  0x4f   : > { %4660 = vmatmul.mubr.msk.f32.gmra.mrb[24].mxu1 %vm281_vm0, %v5772_v41  ;;  %4886 = vmatmul.mubr.msk.f32.gmra.mrb[8].mxu0 %vm281_vm0, %v5775_v42  ;;  %v5962_v41 = vld [vmem:[%s5566_s11 + $0x16a] sm:$0xff] }
  0x50   : > { %4662 = vmatprep.mubr.msk.f32.mxu1 %vm281_vm0, %v5778_v43  ;;  %4888 = vmatprep.mubr.msk.f32.mxu0 %vm281_vm0, %v5781_v44  ;;  %v5959_v43 = vld [vmem:[%s5566_s11 + $0x90] sm:$0xff] }
  0x51   : > { %6665 = vst [vmem:[#allocation28_spill] sm:$0xff] %v5959_v43 }
  0x53   : > { %4663 = vmatmul.mubr.msk.f32.gmra.mrb[26].mxu1 %vm281_vm0, %v5792_v45  ;;  %4889 = vmatmul.mubr.msk.f32.gmra.mrb[10].mxu0 %vm281_vm0, %v5795_v46  ;;  %v5956_v45 = vld [vmem:[%s5566_s11 + $0x15a] sm:$0xff] }
  0x54   : > { %4665 = vmatprep.mubr.msk.f32.mxu1 %vm281_vm0, %v5798_v47  ;;  %4891 = vmatprep.mubr.msk.f32.mxu0 %vm281_vm0, %v5801_v48  ;;  %v5953_v47 = vld [vmem:[%s5566_s11 + $0x80] sm:$0xff] }
  0x55   : > { %6664 = vst [vmem:[#allocation27_spill] sm:$0xff] %v5953_v47 }
  0x57   : > { %4666 = vmatmul.mubr.msk.f32.gmra.mrb[28].mxu1 %vm281_vm0, %v5812_v49  ;;  %4892 = vmatmul.mubr.msk.f32.gmra.mrb[12].mxu0 %vm281_vm0, %v5815_v50  ;;  %v5942_v49 = vld [vmem:[%s5566_s11 + $0x152] sm:$0xff] }
  0x58   : > { %4668 = vmatprep.mubr.msk.f32.mxu1 %vm281_vm0, %v5818_v51  ;;  %4894 = vmatprep.mubr.msk.f32.mxu0 %vm281_vm0, %v5821_v52  ;;  %v5939_v51 = vld [vmem:[%s5566_s11 + $0x78] sm:$0xff] }
  0x59   : > { %6663 = vst [vmem:[#allocation26_spill] sm:$0xff] %v5939_v51 }
  0x5b   : > { %4669 = vmatmul.mubr.msk.f32.gmra.mrb[30].mxu1 %vm281_vm0, %v5832_v53  ;;  %4895 = vmatmul.mubr.msk.f32.gmra.mrb[14].mxu0 %vm281_vm0, %v5835_v54  ;;  %v5936_v53 = vld [vmem:[%s5566_s11 + $0x142] sm:$0xff] }
  0x5c   : > { %4673 = vmatprep.mubr.msk.f32.mxu1 %vm281_vm0, %v214_v55  ;;  %4897 = vmatprep.mubr.msk.f32.mxu0 %vm281_vm0, %v5839_v56  ;;  %v5922_v55 = vld [vmem:[%s5566_s11 + $0x13a] sm:$0xff] }
  0x5f   : > { %4674 = vmatmul.mubr.msk.f32.vlgmr.msra.gmra.mrb[0].mxu1 %vm281_vm0, %v215_v57  ;;  %4898 = vmatmul.mubr.msk.f32.gmra.mrb[16].mxu0 %vm281_vm0, %v5850_v58  ;;  %v5933_v57 = vld [vmem:[%s5566_s11 + $0x68] sm:$0xff] }
  0x60   : > { %4722 = vmatpush3.msra.mxu1 %v5585_v10  ;;  %4676 = vmatprep.mubr.msk.f32.mxu1 %vm281_vm0, %v5853_v59  ;;  %v5919_v10 = vld [vmem:[%s5566_s11 + $0x60] sm:$0xff]  ;;  %6662 = vst [vmem:[#allocation25_spill] sm:$0xff] %v5933_v57 }
  0x61   : > { %4900 = vmatprep.mubr.msk.f32.mxu0 %vm281_vm0, %v5856_v60  ;;  %4771 = vmatprep.subr.mxu1 %v5861_v61  ;;  %6661 = vst [vmem:[#allocation24_spill] sm:$0xff] %v5919_v10  ;;  %v5999_v59 = vld [vmem:[%s5566_s11 + $0xc0] sm:$0xff] }
  0x63   : > { %4677 = vmatmul.mubr.msk.f32.gmra.mrb[2].mxu1 %vm281_vm0, %v5870_v62  ;;  %4901 = vmatmul.mubr.msk.f32.gmra.mrb[18].mxu0 %vm281_vm0, %v5873_v63  ;;  %v5993_v62 = vld [vmem:[%s5566_s11 + $0xb0] sm:$0xff] }
  0x64   : > { %4679 = vmatprep.mubr.msk.f32.mxu1 %vm281_vm0, %v5878_v0  ;;  %4903 = vmatprep.mubr.msk.f32.mxu0 %vm281_vm0, %v5881_v2  ;;  %6670 = vst [vmem:[#allocation33_spill] sm:$0xff] %v5993_v62 }
  0x67   : > { %4680 = vmatmul.mubr.msk.f32.gmra.mrb[4].mxu1 %vm281_vm0, %v5893_v3  ;;  %4904 = vmatmul.mubr.msk.f32.gmra.mrb[20].mxu0 %vm281_vm0, %v5896_v4 }
  0x68   : > { %4682 = vmatprep.mubr.msk.f32.mxu1 %vm281_vm0, %v5899_v5  ;;  %4906 = vmatprep.mubr.msk.f32.mxu0 %vm281_vm0, %v5902_v6 }
  0x6b   : > { %4683 = vmatmul.mubr.msk.f32.gmra.mrb[6].mxu1 %vm281_vm0, %v5913_v7  ;;  %4907 = vmatmul.mubr.msk.f32.gmra.mrb[22].mxu0 %vm281_vm0, %v5916_v9 }
  0x6c   : > { %4685 = vmatprep.mubr.msk.f32.mxu1 %vm281_vm0, %v5919_v10  ;;  %4909 = vmatprep.mubr.msk.f32.mxu0 %vm281_vm0, %v5922_v55 }
  0x6f   : > { %4686 = vmatmul.mubr.msk.f32.gmra.mrb[8].mxu1 %vm281_vm0, %v5933_v57  ;;  %4910 = vmatmul.mubr.msk.f32.gmra.mrb[24].mxu0 %vm281_vm0, %v5936_v53 }
  0x70   : > { %4688 = vmatprep.mubr.msk.f32.mxu1 %vm281_vm0, %v5939_v51  ;;  %4912 = vmatprep.mubr.msk.f32.mxu0 %vm281_vm0, %v5942_v49 }
  0x73   : > { %4689 = vmatmul.mubr.msk.f32.gmra.mrb[10].mxu1 %vm281_vm0, %v5953_v47  ;;  %4913 = vmatmul.mubr.msk.f32.gmra.mrb[26].mxu0 %vm281_vm0, %v5956_v45 }
  0x74   : > { %4691 = vmatprep.mubr.msk.f32.mxu1 %vm281_vm0, %v5959_v43  ;;  %4915 = vmatprep.mubr.msk.f32.mxu0 %vm281_vm0, %v5962_v41 }
  0x77   : > { %4692 = vmatmul.mubr.msk.f32.gmra.mrb[12].mxu1 %vm281_vm0, %v5973_v39  ;;  %4916 = vmatmul.mubr.msk.f32.gmra.mrb[28].mxu0 %vm281_vm0, %v5976_v37  ;;  %v6018_v37 = vld [vmem:[%s6592_s1 + $0x40] sm:$0xff] }
  0x78   : > { %4694 = vmatprep.mubr.msk.f32.mxu1 %vm281_vm0, %v5979_v35  ;;  %4918 = vmatprep.mubr.msk.f32.mxu0 %vm281_vm0, %v5982_v33  ;;  %v6010_v33 = vld [vmem:[%s5566_s11 + $0xc8] sm:$0xff] }
  0x79   : > { %6672 = vst [vmem:[#allocation35_spill] sm:$0xff] %v6010_v33 }
  0x7b   : > { %4695 = vmatmul.mubr.msk.f32.gmra.mrb[14].mxu1 %vm281_vm0, %v5993_v62  ;;  %4919 = vmatmul.mubr.msk.f32.gmra.mrb[30].mxu0 %vm281_vm0, %v5996_v31  ;;  %v6028_v31 = vld [vmem:[%s5566_s11 + $0xe0] sm:$0xff] }
  0x7c   : > { %4697 = vmatprep.mubr.msk.f32.mxu1 %vm281_vm0, %v5999_v59  ;;  %4923 = vmatprep.mubr.msk.f32.mxu0 %vm281_vm0, %v5878_v0  ;;  %v6033_v0 = vld [vmem:[%s5566_s11 + $0xf0] sm:$0xff] }
  0x7f   : > { %4698 = vmatmul.mubr.msk.f32.gmra.mrb[16].mxu1 %vm281_vm0, %v6010_v33  ;;  %4924 = vmatmul.mubr.msk.f32.vlgmr.msra.gmra.mrb[0].mxu0 %vm281_vm0, %v5893_v3  ;;  %v924_v3 = vld [vmem:[%s5566_s11 + $0x2] sm:$0xff] }
  0x80   : > { %4972 = vmatpush3.msra.mxu0 %v5700_v28  ;;  %4700 = vmatprep.mubr.msk.f32.mxu1 %vm281_vm0, %v6013_v29  ;;  %v6045_v28 = vld [vmem:[%s5566_s11 + $0xf8] sm:$0xff] }
  0x81   : > { %4926 = vmatprep.mubr.msk.f32.mxu0 %vm281_vm0, %v5899_v5  ;;  %5021 = vmatprep.subr.mxu0 %v6018_v37  ;;  %v6048_v5 = vld [vmem:[%s5566_s11 + $0x108] sm:$0xff] }
  0x83   : > { %4701 = vmatmul.mubr.msk.f32.gmra.mrb[18].mxu1 %vm281_vm0, %v6028_v31  ;;  %4927 = vmatmul.mubr.msk.f32.gmra.mrb[2].mxu0 %vm281_vm0, %v5913_v7  ;;  %v6059_v7 = vld [vmem:[%s5566_s11 + $0x110] sm:$0xff] }
  0x84   : > { %4703 = vmatprep.mubr.msk.f32.mxu1 %vm281_vm0, %v6033_v0  ;;  %4929 = vmatprep.mubr.msk.f32.mxu0 %vm281_vm0, %v5919_v10  ;;  %v6062_v10 = vld [vmem:[%s5566_s11 + $0x120] sm:$0xff] }
  0x87   : > { %4704 = vmatmul.mubr.msk.f32.gmra.mrb[20].mxu1 %vm281_vm0, %v6045_v28  ;;  %4930 = vmatmul.mubr.msk.f32.gmra.mrb[4].mxu0 %vm281_vm0, %v5933_v57  ;;  %v6073_v57 = vld [vmem:[%s5566_s11 + $0x128] sm:$0xff] }
  0x88   : > { %4706 = vmatprep.mubr.msk.f32.mxu1 %vm281_vm0, %v6048_v5  ;;  %4932 = vmatprep.mubr.msk.f32.mxu0 %vm281_vm0, %v5939_v51  ;;  %v6076_v51 = vld [vmem:[%s5566_s11 + $0x138] sm:$0xff] }
  0x8b   : > { %4707 = vmatmul.mubr.msk.f32.gmra.mrb[22].mxu1 %vm281_vm0, %v6059_v7  ;;  %4933 = vmatmul.mubr.msk.f32.gmra.mrb[6].mxu0 %vm281_vm0, %v5953_v47  ;;  %v6087_v47 = vld [vmem:[%s5566_s11 + $0x140] sm:$0xff] }
  0x8c   : > { %4709 = vmatprep.mubr.msk.f32.mxu1 %vm281_vm0, %v6062_v10  ;;  %4935 = vmatprep.mubr.msk.f32.mxu0 %vm281_vm0, %v5959_v43  ;;  %v6090_v43 = vld [vmem:[%s5566_s11 + $0x150] sm:$0xff] }
  0x8f   : > { %4710 = vmatmul.mubr.msk.f32.gmra.mrb[24].mxu1 %vm281_vm0, %v6073_v57  ;;  %4936 = vmatmul.mubr.msk.f32.gmra.mrb[8].mxu0 %vm281_vm0, %v5973_v39  ;;  %v6101_v39 = vld [vmem:[%s5566_s11 + $0x158] sm:$0xff] }
  0x90   : > { %4712 = vmatprep.mubr.msk.f32.mxu1 %vm281_vm0, %v6076_v51  ;;  %4938 = vmatprep.mubr.msk.f32.mxu0 %vm281_vm0, %v5979_v35  ;;  %v6104_v35 = vld [vmem:[%s5566_s11 + $0x168] sm:$0xff] }
  0x93   : > { %4713 = vmatmul.mubr.msk.f32.gmra.mrb[26].mxu1 %vm281_vm0, %v6087_v47  ;;  %4939 = vmatmul.mubr.msk.f32.gmra.mrb[10].mxu0 %vm281_vm0, %v5993_v62  ;;  %v6115_v62 = vld [vmem:[%s5566_s11 + $0x170] sm:$0xff] }
  0x94   : > { %4715 = vmatprep.mubr.msk.f32.mxu1 %vm281_vm0, %v6090_v43  ;;  %4941 = vmatprep.mubr.msk.f32.mxu0 %vm281_vm0, %v5999_v59 }
  0x97   : > { %4716 = vmatmul.mubr.msk.f32.gmra.mrb[28].mxu1 %vm281_vm0, %v6101_v39  ;;  %4942 = vmatmul.mubr.msk.f32.gmra.mrb[12].mxu0 %vm281_vm0, %v6010_v33  ;;  %v925_v33 = vld [vmem:[%s5566_s11 + $0xa] sm:$0xff] }
  0x98   : > { %4718 = vmatprep.mubr.msk.f32.mxu1 %vm281_vm0, %v6104_v35  ;;  %4944 = vmatprep.mubr.msk.f32.mxu0 %vm281_vm0, %v6013_v29 }
  0x9b   : > { %4719 = vmatmul.mubr.msk.f32.gmra.mrb[30].mxu1 %vm281_vm0, %v6115_v62  ;;  %4945 = vmatmul.mubr.msk.f32.gmra.mrb[14].mxu0 %vm281_vm0, %v6028_v31 }
  0x9c   : > { %4723 = vmatprep.mubr.msk.f32.mxu1 %vm281_vm0, %v924_v3  ;;  %4947 = vmatprep.mubr.msk.f32.mxu0 %vm281_vm0, %v6033_v0  ;;  %v6689_v3 = vld [vmem:[#allocation25_spill] sm:$0xff] }
  0x9f   : > { %4724 = vmatmul.mubr.msk.f32.vlgmr.msra.gmra.mrb[0].mxu1 %vm281_vm0, %v925_v33  ;;  %4948 = vmatmul.mubr.msk.f32.gmra.mrb[16].mxu0 %vm281_vm0, %v6045_v28  ;;  %v4152_v33 = vld [vmem:[%s5566_s11 + $0x198] sm:$0xff] }
  0xa0   : > { %4772 = vmatpush3.msra.mxu1 %v5861_v61  ;;  %4726 = vmatprep.mubr.msk.f32.mxu1 %vm281_vm0, %v5678_v24  ;;  %v6168_v24 = vld [vmem:[%s5566_s11 + $0x180] sm:$0xff] }
  0xa1   : > { %4950 = vmatprep.mubr.msk.f32.mxu0 %vm281_vm0, %v6048_v5  ;;  %5071 = vmatprep.subr.mxu1 %v5551_v1  ;;  %v4153_v61 = vld [vmem:[%s5566_s11 + $0x1a0] sm:$0xff] }
  0xa3   : > { %4727 = vmatmul.mubr.msk.f32.gmra.mrb[2].mxu1 %vm281_vm0, %v5689_v25  ;;  %4951 = vmatmul.mubr.msk.f32.gmra.mrb[18].mxu0 %vm281_vm0, %v6059_v7  ;;  %v6179_v25 = vld [vmem:[%s5566_s11 + $0x188] sm:$0xff] }
  0xa4   : > { %4729 = vmatprep.mubr.msk.f32.mxu1 %vm281_vm0, %v5695_v27  ;;  %4953 = vmatprep.mubr.msk.f32.mxu0 %vm281_vm0, %v6062_v10 }
  0xa7   : > { %4730 = vmatmul.mubr.msk.f32.gmra.mrb[4].mxu1 %vm281_vm0, %v5712_v30  ;;  %4954 = vmatmul.mubr.msk.f32.gmra.mrb[20].mxu0 %vm281_vm0, %v6073_v57 }
  0xa8   : > { %4732 = vmatprep.mubr.msk.f32.mxu1 %vm281_vm0, %v5720_v32  ;;  %4956 = vmatprep.mubr.msk.f32.mxu0 %vm281_vm0, %v6076_v51 }
  0xab   : > { %4733 = vmatmul.mubr.msk.f32.gmra.mrb[6].mxu1 %vm281_vm0, %v5735_v34  ;;  %4957 = vmatmul.mubr.msk.f32.gmra.mrb[22].mxu0 %vm281_vm0, %v6087_v47 }
  0xac   : > { %4735 = vmatprep.mubr.msk.f32.mxu1 %vm281_vm0, %v5741_v36  ;;  %4959 = vmatprep.mubr.msk.f32.mxu0 %vm281_vm0, %v6090_v43 }
  0xaf   : > { %4736 = vmatmul.mubr.msk.f32.gmra.mrb[8].mxu1 %vm281_vm0, %v5755_v38  ;;  %4960 = vmatmul.mubr.msk.f32.gmra.mrb[24].mxu0 %vm281_vm0, %v6101_v39 }
  0xb0   : > { %4738 = vmatprep.mubr.msk.f32.mxu1 %vm281_vm0, %v5761_v40  ;;  %4962 = vmatprep.mubr.msk.f32.mxu0 %vm281_vm0, %v6104_v35 }
  0xb3   : > { %4739 = vmatmul.mubr.msk.f32.gmra.mrb[10].mxu1 %vm281_vm0, %v5775_v42  ;;  %4963 = vmatmul.mubr.msk.f32.gmra.mrb[26].mxu0 %vm281_vm0, %v6115_v62 }
  0xb4   : > { %4741 = vmatprep.mubr.msk.f32.mxu1 %vm281_vm0, %v5781_v44  ;;  %4965 = vmatprep.mubr.msk.f32.mxu0 %vm281_vm0, %v6168_v24 }
  0xb7   : > { %4742 = vmatmul.mubr.msk.f32.gmra.mrb[12].mxu1 %vm281_vm0, %v5795_v46  ;;  %4966 = vmatmul.mubr.msk.f32.gmra.mrb[28].mxu0 %vm281_vm0, %v6179_v25 }
  0xb8   : > { %4744 = vmatprep.mubr.msk.f32.mxu1 %vm281_vm0, %v5801_v48  ;;  %4968 = vmatprep.mubr.msk.f32.mxu0 %vm281_vm0, %v4152_v33  ;;  %v6690_v33 = vld [vmem:[#allocation13_spill] sm:$0xff] }
  0xbb   : > { %4745 = vmatmul.mubr.msk.f32.gmra.mrb[14].mxu1 %vm281_vm0, %v5815_v50  ;;  %4969 = vmatmul.mubr.msk.f32.gmra.mrb[30].mxu0 %vm281_vm0, %v4153_v61  ;;  %v6691_v61 = vld [vmem:[#allocation26_spill] sm:$0xff] }
  0xbc   : > { %4747 = vmatprep.mubr.msk.f32.mxu1 %vm281_vm0, %v5821_v52  ;;  %4973 = vmatprep.mubr.msk.f32.mxu0 %vm281_vm0, %v5575_v8  ;;  %v6673_v8 = vld [vmem:[#allocation30_spill] sm:$0xff] }
  0xbf   : > { %4748 = vmatmul.mubr.msk.f32.gmra.mrb[16].mxu1 %vm281_vm0, %v5835_v54  ;;  %4974 = vmatmul.mubr.msk.f32.vlgmr.msra.gmra.mrb[0].mxu0 %vm281_vm0, %v5588_v11  ;;  %v6674_v11 = vld [vmem:[#allocation5_spill] sm:$0xff] }
  0xc0   : > { %5022 = vmatpush3.msra.mxu0 %v6018_v37  ;;  %4750 = vmatprep.mubr.msk.f32.mxu1 %vm281_vm0, %v5839_v56  ;;  %v6688_v37 = vld [vmem:[#allocation12_spill] sm:$0xff] }
  0xc1   : > { %4976 = vmatprep.mubr.msk.f32.mxu0 %vm281_vm0, %v5594_v12  ;;  %v6675_v12 = vld [vmem:[#allocation18_spill] sm:$0xff] }
  0xc3   : > { %4751 = vmatmul.mubr.msk.f32.gmra.mrb[18].mxu1 %vm281_vm0, %v5850_v58  ;;  %4977 = vmatmul.mubr.msk.f32.gmra.mrb[2].mxu0 %vm281_vm0, %v5605_v13  ;;  %v6676_v13 = vld [vmem:[#allocation6_spill] sm:$0xff] }
  0xc4   : > { %4753 = vmatprep.mubr.msk.f32.mxu1 %vm281_vm0, %v5856_v60  ;;  %4979 = vmatprep.mubr.msk.f32.mxu0 %vm281_vm0, %v5608_v14  ;;  %v6677_v14 = vld [vmem:[#allocation19_spill] sm:$0xff] }
  0xc7   : > { %4754 = vmatmul.mubr.msk.f32.gmra.mrb[20].mxu1 %vm281_vm0, %v5873_v63  ;;  %4980 = vmatmul.mubr.msk.f32.gmra.mrb[4].mxu0 %vm281_vm0, %v5619_v15  ;;  %v6678_v15 = vld [vmem:[#allocation7_spill] sm:$0xff] }
  0xc8   : > { %4756 = vmatprep.mubr.msk.f32.mxu1 %vm281_vm0, %v5881_v2  ;;  %4982 = vmatprep.mubr.msk.f32.mxu0 %vm281_vm0, %v5622_v16  ;;  %v6679_v16 = vld [vmem:[#allocation20_spill] sm:$0xff] }
  0xcb   : > { %4757 = vmatmul.mubr.msk.f32.gmra.mrb[22].mxu1 %vm281_vm0, %v5896_v4  ;;  %4983 = vmatmul.mubr.msk.f32.gmra.mrb[6].mxu0 %vm281_vm0, %v5633_v17  ;;  %v6680_v17 = vld [vmem:[#allocation8_spill] sm:$0xff] }
  0xcc   : > { %4759 = vmatprep.mubr.msk.f32.mxu1 %vm281_vm0, %v5902_v6  ;;  %4985 = vmatprep.mubr.msk.f32.mxu0 %vm281_vm0, %v5636_v18  ;;  %v6681_v18 = vld [vmem:[#allocation21_spill] sm:$0xff] }
  0xcf   : > { %4760 = vmatmul.mubr.msk.f32.gmra.mrb[24].mxu1 %vm281_vm0, %v5916_v9  ;;  %4986 = vmatmul.mubr.msk.f32.gmra.mrb[8].mxu0 %vm281_vm0, %v5647_v19  ;;  %v6682_v19 = vld [vmem:[#allocation9_spill] sm:$0xff] }
  0xd0   : > { %4762 = vmatprep.mubr.msk.f32.mxu1 %vm281_vm0, %v5922_v55  ;;  %4988 = vmatprep.mubr.msk.f32.mxu0 %vm281_vm0, %v5650_v20  ;;  %v6683_v20 = vld [vmem:[#allocation22_spill] sm:$0xff] }
  0xd3   : > { %4763 = vmatmul.mubr.msk.f32.gmra.mrb[26].mxu1 %vm281_vm0, %v5936_v53  ;;  %4989 = vmatmul.mubr.msk.f32.gmra.mrb[10].mxu0 %vm281_vm0, %v5661_v21  ;;  %v6684_v21 = vld [vmem:[#allocation10_spill] sm:$0xff] }
  0xd4   : > { %4765 = vmatprep.mubr.msk.f32.mxu1 %vm281_vm0, %v5942_v49  ;;  %4991 = vmatprep.mubr.msk.f32.mxu0 %vm281_vm0, %v5664_v22  ;;  %v6686_v22 = vld [vmem:[#allocation11_spill] sm:$0xff] }
  0xd7   : > { %4766 = vmatmul.mubr.msk.f32.gmra.mrb[28].mxu1 %vm281_vm0, %v5956_v45  ;;  %4992 = vmatmul.mubr.msk.f32.gmra.mrb[12].mxu0 %vm281_vm0, %v5675_v23  ;;  %v6687_v23 = vld [vmem:[#allocation24_spill] sm:$0xff] }
  0xd8   : > { %4768 = vmatprep.mubr.msk.f32.mxu1 %vm281_vm0, %v5962_v41  ;;  %4994 = vmatprep.mubr.msk.f32.mxu0 %vm281_vm0, %v5692_v26 }
  0xdb   : > { %4769 = vmatmul.mubr.msk.f32.gmra.mrb[30].mxu1 %vm281_vm0, %v6673_v8  ;;  %4995 = vmatmul.mubr.msk.f32.gmra.mrb[14].mxu0 %vm281_vm0, %v6674_v11  ;;  %v6700_v8 = vld [vmem:[#allocation33_spill] sm:$0xff] }
  0xdc   : > { %4773 = vmatprep.mubr.msk.f32.mxu1 %vm281_vm0, %v6675_v12  ;;  %4997 = vmatprep.mubr.msk.f32.mxu0 %vm281_vm0, %v6676_v13  ;;  %v6692_v12 = vld [vmem:[#allocation14_spill] sm:$0xff] }
  0xdf   : > { %4774 = vmatmul.mubr.msk.f32.vlgmr.msra.gmra.mrb[0].mxu1 %vm281_vm0, %v6677_v14  ;;  %4998 = vmatmul.mubr.msk.f32.gmra.mrb[16].mxu0 %vm281_vm0, %v6678_v15  ;;  %v6693_v14 = vld [vmem:[#allocation27_spill] sm:$0xff] }
  0xe0   : > { %5072 = vmatpush3.msra.mxu1 %v5551_v1  ;;  %4776 = vmatprep.mubr.msk.f32.mxu1 %vm281_vm0, %v6679_v16  ;;  %v6685_v1 = vld [vmem:[#allocation23_spill] sm:$0xff] }
  0xe1   : > { %5000 = vmatprep.mubr.msk.f32.mxu0 %vm281_vm0, %v6680_v17  ;;  %v6694_v16 = vld [vmem:[#allocation15_spill] sm:$0xff] }
  0xe3   : > { %4777 = vmatmul.mubr.msk.f32.gmra.mrb[2].mxu1 %vm281_vm0, %v6681_v18  ;;  %5001 = vmatmul.mubr.msk.f32.gmra.mrb[18].mxu0 %vm281_vm0, %v6682_v19  ;;  %v6695_v18 = vld [vmem:[#allocation28_spill] sm:$0xff] }
  0xe4   : > { %4779 = vmatprep.mubr.msk.f32.mxu1 %vm281_vm0, %v6683_v20  ;;  %5003 = vmatprep.mubr.msk.f32.mxu0 %vm281_vm0, %v6684_v21  ;;  %v6696_v20 = vld [vmem:[#allocation16_spill] sm:$0xff] }
  0xe7   : > { %4780 = vmatmul.mubr.msk.f32.gmra.mrb[4].mxu1 %vm281_vm0, %v6685_v1  ;;  %5004 = vmatmul.mubr.msk.f32.gmra.mrb[20].mxu0 %vm281_vm0, %v6686_v22  ;;  %v6304_v1 = vld [vmem:[%s5566_s11 + $0x181] sm:$0xff] }
  0xe8   : > { %4782 = vmatprep.mubr.msk.f32.mxu1 %vm281_vm0, %v6687_v23  ;;  %5006 = vmatprep.mubr.msk.f32.mxu0 %vm281_vm0, %v6688_v37  ;;  %v6697_v23 = vld [vmem:[#allocation29_spill] sm:$0xff] }
  0xeb   : > { %4783 = vmatmul.mubr.msk.f32.gmra.mrb[6].mxu1 %vm281_vm0, %v6689_v3  ;;  %5007 = vmatmul.mubr.msk.f32.gmra.mrb[22].mxu0 %vm281_vm0, %v6690_v33  ;;  %v6698_v3 = vld [vmem:[#allocation17_spill] sm:$0xff] }
  0xec   : > { %4785 = vmatprep.mubr.msk.f32.mxu1 %vm281_vm0, %v6691_v61  ;;  %5009 = vmatprep.mubr.msk.f32.mxu0 %vm281_vm0, %v6692_v12  ;;  %v6699_v61 = vld [vmem:[#allocation31_spill] sm:$0xff] }
  0xef   : > { %4786 = vmatmul.mubr.msk.f32.gmra.mrb[8].mxu1 %vm281_vm0, %v6693_v14  ;;  %5010 = vmatmul.mubr.msk.f32.gmra.mrb[24].mxu0 %vm281_vm0, %v6694_v16  ;;  %v6315_v14 = vld [vmem:[%s5566_s11 + $0x189] sm:$0xff] }
  0xf0   : > { %4788 = vmatprep.mubr.msk.f32.mxu1 %vm281_vm0, %v6695_v18  ;;  %5012 = vmatprep.mubr.msk.f32.mxu0 %vm281_vm0, %v6696_v20  ;;  %v4217_v18 = vld [vmem:[%s5566_s11 + $0x199] sm:$0xff] }
  0xf3   : > { %4789 = vmatmul.mubr.msk.f32.gmra.mrb[10].mxu1 %vm281_vm0, %v6697_v23  ;;  %5013 = vmatmul.mubr.msk.f32.gmra.mrb[26].mxu0 %vm281_vm0, %v6698_v3  ;;  %v4218_v23 = vld [vmem:[%s5566_s11 + $0x1a1] sm:$0xff]  ;;  %v6701_v3 = vld [vmem:[#allocation35_spill] sm:$0xff] }
  0xf4   : > { %4791 = vmatprep.mubr.msk.f32.mxu1 %vm281_vm0, %v6699_v61  ;;  %5015 = vmatprep.mubr.msk.f32.mxu0 %vm281_vm0, %v6304_v1 }
  0xf7   : > { %4792 = vmatmul.mubr.msk.f32.gmra.mrb[12].mxu1 %vm281_vm0, %v6700_v8  ;;  %5016 = vmatmul.mubr.msk.f32.gmra.mrb[28].mxu0 %vm281_vm0, %v6315_v14 }
  0xf8   : > { %4794 = vmatprep.mubr.msk.f32.mxu1 %vm281_vm0, %v5999_v59  ;;  %5018 = vmatprep.mubr.msk.f32.mxu0 %vm281_vm0, %v4217_v18 }
  0xfb   : > { %4795 = vmatmul.mubr.msk.f32.gmra.mrb[14].mxu1 %vm281_vm0, %v6701_v3  ;;  %5019 = vmatmul.mubr.msk.f32.gmra.mrb[30].mxu0 %vm281_vm0, %v4218_v23 }
  0xfc   : > { %4797 = vmatprep.mubr.msk.f32.mxu1 %vm281_vm0, %v6013_v29  ;;  %5023 = vmatprep.mubr.msk.f32.mxu0 %vm281_vm0, %v5695_v27  ;;  %v6703_v27 = vld [vmem:[#allocation32_spill] sm:$0xff] }
  0xfd   : > { %v4282_v29 = vld [vmem:[%s5566_s11 + $0x19a] sm:$0xff] }
  0xff   : > { %4798 = vmatmul.mubr.msk.f32.gmra.mrb[16].mxu1 %vm281_vm0, %v6028_v31  ;;  %5024 = vmatmul.mubr.msk.f32.vlgmr.msra.gmra.mrb[0].mxu0 %vm281_vm0, %v5712_v30  ;;  %v6704_v30 = vld [vmem:[#allocation17_spill] sm:$0xff]  ;;  %v6705_v31 = vld [vmem:[#allocation34_spill] sm:$0xff] }
 0x100   : > { %4800 = vmatprep.mubr.msk.f32.mxu1 %vm281_vm0, %v6033_v0  ;;  %5026 = vmatprep.mubr.msk.f32.mxu0 %vm281_vm0, %v5720_v32  ;;  %v4283_v32 = vld [vmem:[%s5566_s11 + $0x1a2] sm:$0xff]  ;;  %s3721_s11 = sshll.u32 %s6469_s9, 4  ;;  %s6538_s11 = int_to_ptr.vmem [resolvable:$true] %s3721_s11 }
 0x101   : > { %s5387_s23 = scalar_lea.vmem %s6538_s11, 4096  ;;  %p5394_p1 = scmp.lt.s32.totalorder %s6538_s11, %s5392_s27 }
 0x102   : > { %p5388_p12 = scmp.ne.s32.totalorder %s6538_s11, %s5387_s23  ;;  %p5395_p2 = scmp.lt.s32.totalorder %s5393_s28, %s5387_s23 }
 0x103   : > { %4801 = vmatmul.mubr.msk.f32.gmra.mrb[18].mxu1 %vm281_vm0, %v6045_v28  ;;  %5027 = vmatmul.mubr.msk.f32.gmra.mrb[2].mxu0 %vm281_vm0, %v5735_v34 }
 0x104   : > { %4803 = vmatprep.mubr.msk.f32.mxu1 %vm281_vm0, %v6048_v5  ;;  %5029 = vmatprep.mubr.msk.f32.mxu0 %vm281_vm0, %v5741_v36  ;;  %p5389_p13 = pnand %p5388_p12, %p5530_p4  ;;  %p5396_p3 = por %p5395_p2, %p5394_p1 }
 0x106   : > { %p5390_p0 = pneg %p5389_p13 }
 0x107   : > { %4804 = vmatmul.mubr.msk.f32.gmra.mrb[20].mxu1 %vm281_vm0, %v6059_v7  ;;  %5030 = vmatmul.mubr.msk.f32.gmra.mrb[4].mxu0 %vm281_vm0, %v5755_v38 }
 0x108   : > { %4806 = vmatprep.mubr.msk.f32.mxu1 %vm281_vm0, %v6062_v10  ;;  %5032 = vmatprep.mubr.msk.f32.mxu0 %vm281_vm0, %v5761_v40  ;;  %p5397_p5 = pnand %p5396_p3, %p5390_p0 }
 0x10b   : > { %4807 = vmatmul.mubr.msk.f32.gmra.mrb[22].mxu1 %vm281_vm0, %v6073_v57  ;;  %5033 = vmatmul.mubr.msk.f32.gmra.mrb[6].mxu0 %vm281_vm0, %v5775_v42 }
 0x10c   : > { %4809 = vmatprep.mubr.msk.f32.mxu1 %vm281_vm0, %v6076_v51  ;;  %5035 = vmatprep.mubr.msk.f32.mxu0 %vm281_vm0, %v5781_v44 }
 0x10f   : > { %4810 = vmatmul.mubr.msk.f32.gmra.mrb[24].mxu1 %vm281_vm0, %v6087_v47  ;;  %5036 = vmatmul.mubr.msk.f32.gmra.mrb[8].mxu0 %vm281_vm0, %v5795_v46 }
 0x110   : > { %4812 = vmatprep.mubr.msk.f32.mxu1 %vm281_vm0, %v6090_v43  ;;  %5038 = vmatprep.mubr.msk.f32.mxu0 %vm281_vm0, %v5801_v48 }
 0x113   : > { %4813 = vmatmul.mubr.msk.f32.gmra.mrb[26].mxu1 %vm281_vm0, %v6101_v39  ;;  %5039 = vmatmul.mubr.msk.f32.gmra.mrb[10].mxu0 %vm281_vm0, %v5815_v50 }
 0x114   : > { %4815 = vmatprep.mubr.msk.f32.mxu1 %vm281_vm0, %v6104_v35  ;;  %5041 = vmatprep.mubr.msk.f32.mxu0 %vm281_vm0, %v5821_v52  ;;  %v6465_v52 = vld [vmem:[%s6593_s2] ss:$0 sm:$0xff] }
 0x117   : > { %4816 = vmatmul.mubr.msk.f32.gmra.mrb[28].mxu1 %vm281_vm0, %v6115_v62  ;;  %5042 = vmatmul.mubr.msk.f32.gmra.mrb[12].mxu0 %vm281_vm0, %v5835_v54 }
 0x118   : > { %4818 = vmatprep.mubr.msk.f32.mxu1 %vm281_vm0, %v6168_v24  ;;  %5044 = vmatprep.mubr.msk.f32.mxu0 %vm281_vm0, %v5839_v56 }
 0x11b   : > { %4819 = vmatmul.mubr.msk.f32.gmra.mrb[30].mxu1 %vm281_vm0, %v6179_v25  ;;  %5045 = vmatmul.mubr.msk.f32.gmra.mrb[14].mxu0 %vm281_vm0, %v5850_v58 }
 0x11c   : > { %4847 = vmatprep.mubr.msk.f32.mxu1 %vm281_vm0, %v5692_v26  ;;  %5047 = vmatprep.mubr.msk.f32.mxu0 %vm281_vm0, %v5856_v60  ;;  %v6702_v26 = vld [vmem:[#allocation30_spill] sm:$0xff] }
 0x11f   : > { %4848 = vmatmul.mubr.msk.f32.vlgmr.msra.gmra.mrb[16].mxu1 %vm281_vm0, %v6674_v11  ;;  %5048 = vmatmul.mubr.msk.f32.gmra.mrb[16].mxu0 %vm281_vm0, %v5873_v63 }
 0x120   : > { %4850 = vmatprep.mubr.msk.f32.mxu1 %vm281_vm0, %v6676_v13  ;;  %5050 = vmatprep.mubr.msk.f32.mxu0 %vm281_vm0, %v5881_v2 }
 0x123   : > { %4851 = vmatmul.mubr.msk.f32.gmra.mrb[18].mxu1 %vm281_vm0, %v6678_v15  ;;  %5051 = vmatmul.mubr.msk.f32.gmra.mrb[18].mxu0 %vm281_vm0, %v5896_v4 }
 0x124   : > { %4853 = vmatprep.mubr.msk.f32.mxu1 %vm281_vm0, %v6680_v17  ;;  %5053 = vmatprep.mubr.msk.f32.mxu0 %vm281_vm0, %v5902_v6 }
 0x127   : > { %4854 = vmatmul.mubr.msk.f32.gmra.mrb[20].mxu1 %vm281_vm0, %v6682_v19  ;;  %5054 = vmatmul.mubr.msk.f32.gmra.mrb[20].mxu0 %vm281_vm0, %v5916_v9 }
 0x128   : > { %4856 = vmatprep.mubr.msk.f32.mxu1 %vm281_vm0, %v6684_v21  ;;  %5056 = vmatprep.mubr.msk.f32.mxu0 %vm281_vm0, %v5922_v55 }
 0x12b   : > { %4857 = vmatmul.mubr.msk.f32.gmra.mrb[22].mxu1 %vm281_vm0, %v6686_v22  ;;  %5057 = vmatmul.mubr.msk.f32.gmra.mrb[22].mxu0 %vm281_vm0, %v5936_v53 }
 0x12c   : > { %4859 = vmatprep.mubr.msk.f32.mxu1 %vm281_vm0, %v6688_v37  ;;  %5059 = vmatprep.mubr.msk.f32.mxu0 %vm281_vm0, %v5942_v49 }
 0x12f   : > { %4860 = vmatmul.mubr.msk.f32.gmra.mrb[24].mxu1 %vm281_vm0, %v6690_v33  ;;  %5060 = vmatmul.mubr.msk.f32.gmra.mrb[24].mxu0 %vm281_vm0, %v5956_v45 }
 0x130   : > { %4862 = vmatprep.mubr.msk.f32.mxu1 %vm281_vm0, %v6692_v12  ;;  %5062 = vmatprep.mubr.msk.f32.mxu0 %vm281_vm0, %v5962_v41 }
 0x133   : > { %4863 = vmatmul.mubr.msk.f32.gmra.mrb[26].mxu1 %vm281_vm0, %v6694_v16  ;;  %5063 = vmatmul.mubr.msk.f32.gmra.mrb[26].mxu0 %vm281_vm0, %v6702_v26 }
 0x134   : > { %4865 = vmatprep.mubr.msk.f32.mxu1 %vm281_vm0, %v6696_v20  ;;  %5065 = vmatprep.mubr.msk.f32.mxu0 %vm281_vm0, %v6703_v27 }
 0x137   : > { %4866 = vmatmul.mubr.msk.f32.gmra.mrb[28].mxu1 %vm281_vm0, %v6704_v30  ;;  %5066 = vmatmul.mubr.msk.f32.gmra.mrb[28].mxu0 %vm281_vm0, %v6705_v31 }
 0x138   : > { %4868 = vmatprep.mubr.msk.f32.mxu1 %vm281_vm0, %v6304_v1  ;;  %5068 = vmatprep.mubr.msk.f32.mxu0 %vm281_vm0, %v4282_v29 }
 0x13b   : > { %4869 = vmatmul.mubr.msk.f32.gmra.mrb[30].mxu1 %vm281_vm0, %v6315_v14  ;;  %5069 = vmatmul.mubr.msk.f32.gmra.mrb[30].mxu0 %vm281_vm0, %v4283_v32 }
 0x1b2   : > { %v4775_v34 = vpop.f32.mrb[0].mxu1 }
 0x1b3   : > { %v1508_v35 = vpop.f32.mrb[1].mxu1 }
 0x1b6   : > { %v4778_v36 = vpop.f32.mrb[2].mxu1 }
 0x1b7   : > { %v1518_v38 = vpop.f32.mrb[3].mxu1 }
 0x1ba   : > { %v4781_v39 = vpop.f32.mrb[4].mxu1 }
 0x1bb   : > { %v1528_v40 = vpop.f32.mrb[5].mxu1 }
 0x1be   : > { %v4784_v41 = vpop.f32.mrb[6].mxu1 }
 0x1bf   : > { %v1538_v42 = vpop.f32.mrb[7].mxu1 }
 0x1c2   : > { %v4787_v43 = vpop.f32.mrb[8].mxu1 }
 0x1c3   : > { %v1548_v44 = vpop.f32.mrb[9].mxu1 }
 0x1c6   : > { %v4790_v45 = vpop.f32.mrb[10].mxu1 }
 0x1c7   : > { %v1558_v46 = vpop.f32.mrb[11].mxu1 }
 0x1ca   : > { %v4793_v47 = vpop.f32.mrb[12].mxu1 }
 0x1cb   : > { %v1568_v48 = vpop.f32.mrb[13].mxu1 }
 0x1ce   : > { %v4796_v49 = vpop.f32.mrb[14].mxu1 }
 0x1cf   : > { %v6458_v50 = vpop.f32.mrb[15].mxu1 }
 0x1d2   : > { %v5025_v51 = vpop.f32.mrb[0].mxu0 }
 0x1d3   : > { %v5073_v53 = vadd.f32 %v5025_v51, %v4775_v34  ;;  %v3444_v54 = vpop.f32.mrb[1].mxu0 }
 0x1d4   : > { %v5074_v56 = vadd.f32 %v3444_v54, %v1508_v35 }
 0x1d5   : > { %v3643_v58 = vadd.f32 %v5073_v53, %v6465_v52 }
 0x1d6   : > { %v3642_v59 = vadd.f32 %v5074_v56, %v6465_v52  ;;  %v5028_v60 = vpop.f32.mrb[2].mxu0 }
 0x1d7   : > { %3675 = vst [vmem:[%s6469_s9 + $0x8] sm:$0xff] %v3643_v58  ;;  %v5075_v62 = vadd.f32 %v5028_v60, %v4778_v36  ;;  %v3454_v63 = vpop.f32.mrb[3].mxu0 }
 0x1d8   : > { %3674 = vst [vmem:[%s6469_s9] sm:$0xff] %v3642_v59  ;;  %v5076_v0 = vadd.f32 %v3454_v63, %v1518_v38 }
 0x1d9   : > { %v3645_v2 = vadd.f32 %v5075_v62, %v6465_v52 }
 0x1da   : > { %v3644_v4 = vadd.f32 %v5076_v0, %v6465_v52  ;;  %v5031_v5 = vpop.f32.mrb[4].mxu0 }
 0x1db   : > { %3677 = vst [vmem:[%s6469_s9 + $0x18] sm:$0xff] %v3645_v2  ;;  %v5077_v6 = vadd.f32 %v5031_v5, %v4781_v39  ;;  %v3464_v7 = vpop.f32.mrb[5].mxu0 }
 0x1dc   : > { %3676 = vst [vmem:[%s6469_s9 + $0x10] sm:$0xff] %v3644_v4  ;;  %v5078_v9 = vadd.f32 %v3464_v7, %v1528_v40 }
 0x1dd   : > { %v3647_v10 = vadd.f32 %v5077_v6, %v6465_v52 }
 0x1de   : > { %v3646_v55 = vadd.f32 %v5078_v9, %v6465_v52  ;;  %v5034_v57 = vpop.f32.mrb[6].mxu0 }
 0x1df   : > { %3679 = vst [vmem:[%s6469_s9 + $0x28] sm:$0xff] %v3647_v10  ;;  %v5079_v28 = vadd.f32 %v5034_v57, %v4784_v41  ;;  %v3474_v24 = vpop.f32.mrb[7].mxu0 }
 0x1e0   : > { %3678 = vst [vmem:[%s6469_s9 + $0x20] sm:$0xff] %v3646_v55  ;;  %v5080_v25 = vadd.f32 %v3474_v24, %v1538_v42 }
 0x1e1   : > { %v3649_v8 = vadd.f32 %v5079_v28, %v6465_v52 }
 0x1e2   : > { %v3648_v11 = vadd.f32 %v5080_v25, %v6465_v52  ;;  %v5037_v13 = vpop.f32.mrb[8].mxu0 }
 0x1e3   : > { %3681 = vst [vmem:[%s6469_s9 + $0x38] sm:$0xff] %v3649_v8  ;;  %v5081_v15 = vadd.f32 %v5037_v13, %v4787_v43  ;;  %v3484_v17 = vpop.f32.mrb[9].mxu0 }
 0x1e4   : > { %3680 = vst [vmem:[%s6469_s9 + $0x30] sm:$0xff] %v3648_v11  ;;  %v5082_v19 = vadd.f32 %v3484_v17, %v1548_v44 }
 0x1e5   : > { %v3651_v21 = vadd.f32 %v5081_v15, %v6465_v52 }
 0x1e6   : > { %v3650_v22 = vadd.f32 %v5082_v19, %v6465_v52  ;;  %v5040_v37 = vpop.f32.mrb[10].mxu0 }
 0x1e7   : > { %3683 = vst [vmem:[%s6469_s9 + $0x48] sm:$0xff] %v3651_v21  ;;  %v5083_v33 = vadd.f32 %v5040_v37, %v4790_v45  ;;  %v3494_v12 = vpop.f32.mrb[11].mxu0 }
 0x1e8   : > { %3682 = vst [vmem:[%s6469_s9 + $0x40] sm:$0xff] %v3650_v22  ;;  %v5084_v16 = vadd.f32 %v3494_v12, %v1558_v46 }
 0x1e9   : > { %v3653_v20 = vadd.f32 %v5083_v33, %v6465_v52 }
 0x1ea   : > { %v3652_v1 = vadd.f32 %v5084_v16, %v6465_v52  ;;  %v5043_v3 = vpop.f32.mrb[12].mxu0 }
 0x1eb   : > { %3685 = vst [vmem:[%s6469_s9 + $0x58] sm:$0xff] %v3653_v20  ;;  %v5085_v61 = vadd.f32 %v5043_v3, %v4793_v47  ;;  %v3504_v14 = vpop.f32.mrb[13].mxu0 }
 0x1ec   : > { %3684 = vst [vmem:[%s6469_s9 + $0x50] sm:$0xff] %v3652_v1  ;;  %v5086_v18 = vadd.f32 %v3504_v14, %v1568_v48 }
 0x1ed   : > { %v3655_v23 = vadd.f32 %v5085_v61, %v6465_v52 }
 0x1ee   : > { %v3654_v26 = vadd.f32 %v5086_v18, %v6465_v52  ;;  %v5046_v27 = vpop.f32.mrb[14].mxu0 }
 0x1ef   : > { %3687 = vst [vmem:[%s6469_s9 + $0x68] sm:$0xff] %v3655_v23  ;;  %v5087_v29 = vadd.f32 %v5046_v27, %v4796_v49  ;;  %v3514_v30 = vpop.f32.mrb[15].mxu0 }
 0x1f0   : > { %3686 = vst [vmem:[%s6469_s9 + $0x60] sm:$0xff] %v3654_v26  ;;  %v5088_v31 = vadd.f32 %v3514_v30, %v6458_v50 }
 0x1f1   : > { %v3657_v32 = vadd.f32 %v5087_v29, %v6465_v52 }
 0x1f2   : > { %v3656_v34 = vadd.f32 %v5088_v31, %v6465_v52  ;;  %v4849_v35 = vpop.f32.mrb[16].mxu1  ;;  %v5049_v36 = vpop.f32.mrb[16].mxu0 }
 0x1f3   : > { %3689 = vst [vmem:[%s6469_s9 + $0x78] sm:$0xff] %v3657_v32  ;;  %v5089_v38 = vadd.f32 %v5049_v36, %v4849_v35  ;;  %v1975_v39 = vpop.f32.mrb[17].mxu1  ;;  %v3524_v40 = vpop.f32.mrb[17].mxu0 }
 0x1f4   : > { %3688 = vst [vmem:[%s6469_s9 + $0x70] sm:$0xff] %v3656_v34  ;;  %v5090_v41 = vadd.f32 %v3524_v40, %v1975_v39 }
 0x1f5   : > { %v3659_v42 = vadd.f32 %v5089_v38, %v6465_v52 }
 0x1f6   : > { %v3658_v43 = vadd.f32 %v5090_v41, %v6465_v52  ;;  %v4852_v44 = vpop.f32.mrb[18].mxu1  ;;  %v5052_v45 = vpop.f32.mrb[18].mxu0 }
 0x1f7   : > { %3691 = vst [vmem:[%s6469_s9 + $0x88] sm:$0xff] %v3659_v42  ;;  %v5091_v46 = vadd.f32 %v5052_v45, %v4852_v44  ;;  %v1985_v47 = vpop.f32.mrb[19].mxu1  ;;  %v3534_v48 = vpop.f32.mrb[19].mxu0 }
 0x1f8   : > { %3690 = vst [vmem:[%s6469_s9 + $0x80] sm:$0xff] %v3658_v43  ;;  %v5092_v49 = vadd.f32 %v3534_v48, %v1985_v47 }
 0x1f9   : > { %v3661_v50 = vadd.f32 %v5091_v46, %v6465_v52 }
 0x1fa   : > { %v3660_v51 = vadd.f32 %v5092_v49, %v6465_v52  ;;  %v4855_v53 = vpop.f32.mrb[20].mxu1  ;;  %v5055_v54 = vpop.f32.mrb[20].mxu0 }
 0x1fb   : > { %3693 = vst [vmem:[%s6469_s9 + $0x98] sm:$0xff] %v3661_v50  ;;  %v5093_v56 = vadd.f32 %v5055_v54, %v4855_v53  ;;  %v1995_v58 = vpop.f32.mrb[21].mxu1  ;;  %v3544_v59 = vpop.f32.mrb[21].mxu0 }
 0x1fc   : > { %3692 = vst [vmem:[%s6469_s9 + $0x90] sm:$0xff] %v3660_v51  ;;  %v5094_v60 = vadd.f32 %v3544_v59, %v1995_v58 }
 0x1fd   : > { %v3663_v62 = vadd.f32 %v5093_v56, %v6465_v52 }
 0x1fe   : > { %v3662_v63 = vadd.f32 %v5094_v60, %v6465_v52  ;;  %v4858_v0 = vpop.f32.mrb[22].mxu1  ;;  %v5058_v2 = vpop.f32.mrb[22].mxu0 }
 0x1ff   : > { %3695 = vst [vmem:[%s6469_s9 + $0xa8] sm:$0xff] %v3663_v62  ;;  %v5095_v4 = vadd.f32 %v5058_v2, %v4858_v0  ;;  %v2005_v5 = vpop.f32.mrb[23].mxu1  ;;  %v3554_v6 = vpop.f32.mrb[23].mxu0 }
 0x200   : > { %3694 = vst [vmem:[%s6469_s9 + $0xa0] sm:$0xff] %v3662_v63  ;;  %v5096_v7 = vadd.f32 %v3554_v6, %v2005_v5 }
 0x201   : > { %v3665_v9 = vadd.f32 %v5095_v4, %v6465_v52 }
 0x202   : > { %v3664_v10 = vadd.f32 %v5096_v7, %v6465_v52  ;;  %v4861_v55 = vpop.f32.mrb[24].mxu1  ;;  %v5061_v57 = vpop.f32.mrb[24].mxu0 }
 0x203   : > { %3697 = vst [vmem:[%s6469_s9 + $0xb8] sm:$0xff] %v3665_v9  ;;  %v5097_v28 = vadd.f32 %v5061_v57, %v4861_v55  ;;  %v2015_v24 = vpop.f32.mrb[25].mxu1  ;;  %v3564_v25 = vpop.f32.mrb[25].mxu0 }
 0x204   : > { %3696 = vst [vmem:[%s6469_s9 + $0xb0] sm:$0xff] %v3664_v10  ;;  %v5098_v8 = vadd.f32 %v3564_v25, %v2015_v24 }
 0x205   : > { %v3667_v11 = vadd.f32 %v5097_v28, %v6465_v52 }
 0x206   : > { %v3666_v13 = vadd.f32 %v5098_v8, %v6465_v52  ;;  %v4864_v15 = vpop.f32.mrb[26].mxu1  ;;  %v5064_v17 = vpop.f32.mrb[26].mxu0 }
 0x207   : > { %3699 = vst [vmem:[%s6469_s9 + $0xc8] sm:$0xff] %v3667_v11  ;;  %v5099_v19 = vadd.f32 %v5064_v17, %v4864_v15  ;;  %v2025_v21 = vpop.f32.mrb[27].mxu1  ;;  %v3574_v22 = vpop.f32.mrb[27].mxu0 }
 0x208   : > { %3698 = vst [vmem:[%s6469_s9 + $0xc0] sm:$0xff] %v3666_v13  ;;  %v5100_v37 = vadd.f32 %v3574_v22, %v2025_v21 }
 0x209   : > { %v3669_v33 = vadd.f32 %v5099_v19, %v6465_v52 }
 0x20a   : > { %v3668_v12 = vadd.f32 %v5100_v37, %v6465_v52  ;;  %v4867_v16 = vpop.f32.mrb[28].mxu1  ;;  %v5067_v20 = vpop.f32.mrb[28].mxu0 }
 0x20b   : > { %3701 = vst [vmem:[%s6469_s9 + $0xd8] sm:$0xff] %v3669_v33  ;;  %v5101_v1 = vadd.f32 %v5067_v20, %v4867_v16  ;;  %v2035_v3 = vpop.f32.mrb[29].mxu1  ;;  %v3584_v61 = vpop.f32.mrb[29].mxu0 }
 0x20c   : > { %3700 = vst [vmem:[%s6469_s9 + $0xd0] sm:$0xff] %v3668_v12  ;;  %v5102_v14 = vadd.f32 %v3584_v61, %v2035_v3 }
 0x20d   : > { %v3671_v18 = vadd.f32 %v5101_v1, %v6465_v52 }
 0x20e   : > { %v3670_v23 = vadd.f32 %v5102_v14, %v6465_v52  ;;  %v4870_v26 = vpop.f32.mrb[30].mxu1  ;;  %v5070_v27 = vpop.f32.mrb[30].mxu0 }
 0x20f   : > { %3703 = vst [vmem:[%s6469_s9 + $0xe8] sm:$0xff] %v3671_v18  ;;  %v5103_v29 = vadd.f32 %v5070_v27, %v4870_v26  ;;  %v2045_v30 = vpop.f32.mrb[31].mxu1  ;;  %v3594_v31 = vpop.f32.mrb[31].mxu0 }
 0x210   : > { %3702 = vst [vmem:[%s6469_s9 + $0xe0] sm:$0xff] %v3670_v23  ;;  %v5104_v32 = vadd.f32 %v3594_v31, %v2045_v30 }
 0x211   : > { %v3673_v34 = vadd.f32 %v5103_v29, %v6465_v52 }
 0x212   : > { %v3672_v35 = vadd.f32 %v5104_v32, %v6465_v52 }
 0x213   : > { %3705 = vst [vmem:[%s6469_s9 + $0xf8] sm:$0xff] %v3673_v34 }
 0x214   : > { %3704 = vst [vmem:[%s6469_s9 + $0xf0] sm:$0xff] %v3672_v35 }
 0x215   : > { %5400 = shalt.err (!%p5397_p5)
}
 0x216   : > { %s5401_s29 = scalar_lea.hbm %s6536_s21, 4096  ;;  %s5405_s5 = scalar_lea.hbm %s6594_s3, 8192 }
 0x217   : > { %p5402_p6 = scmp.ne.s32.totalorder %s6536_s21, %s5401_s29  ;;  %p5406_p10 = scmp.lt.u32.totalorder %s6536_s21, %s6594_s3 }
 0x218   : > { %p5407_p11 = scmp.lt.u32.totalorder %s5405_s5, %s5401_s29  ;;  %p5409_p13 = scmp.lt.u32.totalorder %s5401_s29, %s6536_s21 }
 0x219   : > { %p5403_p7 = pnand %p5402_p6, %p5530_p4 }
 0x21a   : > { %p5408_p12 = por %p5407_p11, %p5406_p10 }
 0x21b   : > { %p5404_p9 = pneg %p5403_p7 }
 0x21c   : > { %p5410_p0 = por %p5409_p13, %p5408_p12 }
 0x21e   : > { %p5411_p1 = pnand %p5410_p0, %p5404_p9 }
 0x220   : > { %5414 = shalt.err (!%p5411_p1)
}
 0x221   : > { %s5468_s8 = smov 128   ;;  %s5469_s9 = smov 8  }
 0x222   : > { %5330 = dma.vmem_to_hbm [thread:$0]  (%p5530_p4), %s6538_s11, 4096, %s6536_s21, %s6545_s15, %s5468_s8, %s5468_s8, %s5469_s9  }
 0x223 PF: > { %p5336_p2 = scmp.ge.s32.totalorder %s5465_s17, 2  ;;  %s3736_s10 = sand.u32 1, %s5445_s12  }
 0x224   : > { %s3737_s18 = scalar_lea.sflag [#allocation3], %s3736_s10 }
 0x225   : > { %p5333_p3 = pnand %p5336_p2, %p5537_p8 }
 0x227   : > { %5440 = dma.done.wait (!%p5333_p3), %s3737_s18, 4096  }
 0x228   : > { %5442 = vsyncadd (!%p5333_p3), %s3737_s18, 4294963200  ;;  %s16_s17 = sadd.s32 1, %s5465_s17   ;;  %s6706_s12 = smov %s5449_s13 }
 0x229   : > { %p13_p5 = scmp.ge.s32.totalorder %s16_s17, 4   ;;  %s6707_s13 = smov %s5453_s14 }
 0x22a   : > { %s6708_s14 = smov %s5543_s25  ;;  %s6709_s15 = smov %s5461_s16 }
 0x22b   : > { %s6710_s16 = smov %s6712_s20  ;;  %15 = sbr.rel (!%p13_p5) target bundleno = 4 (0x4), region = 83 }
 0x232   :  { %3742 = vsyncpa [#allocation3], 1 }
 0x233   :  { %3744 = vsyncpa [#allocation3 + $0x1], 1 }

</bundles_post_ra>
